<compile_context>
chip_gen: v5e
topology: v5e:2x2
jax: 0.10.0
libtpu: 0.0.40
codegen_flags: <defaults>
</compile_context>

<pallas_src>
import math
from functools import partial

import jax
import jax.numpy as jnp
from jax.experimental import pallas as pl
from jax.experimental.pallas import tpu as pltpu


# ---------------------------------------------------------------------------
# helpers
# ---------------------------------------------------------------------------

def _gelu_tanh(x):
    c = math.sqrt(2.0 / math.pi)
    return 0.5 * x * (1.0 + jnp.tanh(c * (x + 0.044715 * x * x * x)))


def _bytes(a):
    return a.size * a.dtype.itemsize


def _pick_row_tile(m, row_bytes, resident_bytes, budget=24 << 20):
    """Largest multiple-of-8 divisor of m whose double-buffered row tiles + resident
    weights fit `budget`; prefer >= 2 grid steps so both v7x TensorCores get work."""
    cands = [t for t in range(8, m + 1, 8) if m % t == 0]
    if not cands:
        return m
    fits = [t for t in cands if 2 * t * row_bytes + resident_bytes <= budget] or cands[:1]
    multi = [t for t in fits if m // t >= 2]
    return max(multi) if multi else max(fits)


def _vmem_limit(needed_bytes):
    """Explicit scoped-VMEM limit: needed + headroom, clamped to [16 MiB, 48 MiB]
    (stays below v7x's 64 MiB physical VMEM)."""
    return int(min(max(needed_bytes + (4 << 20), 16 << 20), 48 << 20))


# ---------------------------------------------------------------------------
# Kernel 1: shared-LN norm3/norm1 (affines folded) -> single fused [proj|qkv] matmul
# ---------------------------------------------------------------------------

def _ln_fused_matmul_kernel(x_ref, w_ref, b_ref, o_ref, *, eps):
    x = x_ref[...].astype(jnp.float32)
    mu = jnp.mean(x, axis=-1, keepdims=True)
    var = jnp.mean((x - mu) ** 2, axis=-1, keepdims=True)
    xn = (x - mu) * jax.lax.rsqrt(var + eps)       # shared by norm1 & norm3 (affines folded)
    o_ref[...] = (jnp.dot(xn.astype(jnp.bfloat16), w_ref[...],
                          preferred_element_type=jnp.float32)
                  + b_ref[...]).astype(o_ref.dtype)


def fused_ln_proj_qkv(x2, kp):
    Mp, Cin = x2.shape
    C4 = kp["w_k1"].shape[1]
    resident = 2 * (_bytes(kp["w_k1"]) + _bytes(kp["b_k1"]))
    row_bytes = (Cin + C4) * 4
    tm = _pick_row_tile(Mp, row_bytes, resident)
    limit = _vmem_limit(2 * tm * row_bytes + resident)
    return pl.pallas_call(
        partial(_ln_fused_matmul_kernel, eps=1e-5),
        out_shape=jax.ShapeDtypeStruct((Mp, C4), x2.dtype),
        grid=(Mp // tm,),
        in_specs=[pl.BlockSpec((tm, Cin), lambda i: (i, 0)),
                  pl.BlockSpec((Cin, C4), lambda i: (0, 0)),   # resident bf16 weights
                  pl.BlockSpec((1, C4), lambda i: (0, 0))],
        out_specs=pl.BlockSpec((tm, C4), lambda i: (i, 0)),    # lane-dense slab output
        compiler_params=pltpu.CompilerParams(
            dimension_semantics=("parallel",), vmem_limit_bytes=limit),
    )(x2, kp["w_k1"], kp["b_k1"])


# ---------------------------------------------------------------------------
# Kernel 2: causal attention + out-proj + branch1 residual + norm2 + GeGLU MLP + residual
# ---------------------------------------------------------------------------

def _attn_geglu_kernel(slab_ref, wat_ref, bat_ref, n2g_ref, n2b_ref,
                       w01_ref, b01_ref, w2_ref, b2_ref, o_ref, a_scr,
                       *, num_heads, head_dim, scale, eps2, epsm):
    C = num_heads * head_dim
    slab = slab_ref[0].astype(jnp.float32)            # (N, 4C) = [branch1 | q | k | v]
    branch1 = slab[:, :C]
    qkv = slab[:, C:]
    n = slab.shape[0]
    row = jax.lax.broadcasted_iota(jnp.int32, (n, n), 0)
    col = jax.lax.broadcasted_iota(jnp.int32, (n, n), 1)
    causal = col <= row                               # mask computed once, reused per head

    # Per-head results go straight into the (N, C) VMEM scratch: no concat relayout and
    # bounded live ranges across the unrolled head loop.
    for h in range(num_heads):
        lo = h * head_dim
        q = qkv[:, lo:lo + head_dim]
        k = qkv[:, C + lo:C + lo + head_dim]
        v = qkv[:, 2 * C + lo:2 * C + lo + head_dim]
        s = jnp.dot(q, k.T, preferred_element_type=jnp.float32) * scale
        s = jnp.where(causal, s, -1e30)               # diagonal is never masked
        m = jnp.max(s, axis=-1, keepdims=True)
        p = jnp.exp(s - m)
        p = p / jnp.sum(p, axis=-1, keepdims=True)    # exact softmax normalization
        a_scr[:, lo:lo + head_dim] = jnp.dot(p, v, preferred_element_type=jnp.float32)

    # attention out-projection + branch1 residual (bf16 MXU operands, f32 accumulate)
    attn_out = jnp.dot(a_scr[...].astype(jnp.bfloat16), wat_ref[...],
                       preferred_element_type=jnp.float32) + bat_ref[...]
    y = branch1 + attn_out

    # norm2 (affine kept: mlp_norm re-normalizes it) -> mlp_norm (affine folded into w0|w1)
    mu = jnp.mean(y, axis=-1, keepdims=True)
    var = jnp.mean((y - mu) ** 2, axis=-1, keepdims=True)
    h2 = (y - mu) * jax.lax.rsqrt(var + eps2) * n2g_ref[...] + n2b_ref[...]
    mu2 = jnp.mean(h2, axis=-1, keepdims=True)
    var2 = jnp.mean((h2 - mu2) ** 2, axis=-1, keepdims=True)
    h2n = (h2 - mu2) * jax.lax.rsqrt(var2 + epsm)

    # GeGLU MLP: one (C, 2H) matmul for w0|w1, lane-slice g0/g1, gelu*gate, then w2
    g01 = jnp.dot(h2n.astype(jnp.bfloat16), w01_ref[...],
                  preferred_element_type=jnp.float32) + b01_ref[...]
    H = w01_ref.shape[1] // 2
    hmid = _gelu_tanh(g01[:, :H]) * g01[:, H:]
    mlp_out = jnp.dot(hmid.astype(jnp.bfloat16), w2_ref[...],
                      preferred_element_type=jnp.float32) + b2_ref[...]

    o_ref[0] = (y + mlp_out).astype(o_ref.dtype)


def fused_attn_geglu(slab3, kp, num_heads, head_dim):
    B, N, C4 = slab3.shape
    C = num_heads * head_dim
    H2 = kp["w01_t"].shape[1]
    H = H2 // 2
    scale = 1.0 / math.sqrt(head_dim)
    resident = 2 * sum(_bytes(kp[k]) for k in
                       ("attn_proj_wt", "attn_proj_b", "norm2_g", "norm2_b",
                        "w01_t", "b01", "w2_t", "w2_b"))
    per_step = 2 * (N * C4 * 4 + N * C * 4) + N * C * 4
    limit = _vmem_limit(per_step + resident)
    const = lambda r, c: pl.BlockSpec((r, c), lambda b: (0, 0))
    return pl.pallas_call(
        partial(_attn_geglu_kernel, num_heads=num_heads, head_dim=head_dim,
                scale=scale, eps2=1e-5, epsm=1e-6),
        out_shape=jax.ShapeDtypeStruct((B, N, C), slab3.dtype),
        grid=(B,),
        in_specs=[pl.BlockSpec((1, N, C4), lambda b: (b, 0, 0)),
                  const(C, C), const(1, C),
                  const(1, C), const(1, C),
                  const(C, H2), const(1, H2),
                  const(H, C), const(1, C)],
        out_specs=pl.BlockSpec((1, N, C), lambda b: (b, 0, 0)),
        scratch_shapes=[pltpu.VMEM((N, C), jnp.float32)],
        compiler_params=pltpu.CompilerParams(
            dimension_semantics=("parallel",), vmem_limit_bytes=limit),
    )(slab3, kp["attn_proj_wt"], kp["attn_proj_b"], kp["norm2_g"], kp["norm2_b"],
      kp["w01_t"], kp["b01"], kp["w2_t"], kp["w2_b"])


# ---------------------------------------------------------------------------
# Forward pass (wrapper glue is reshapes / cheap slices only)
# ---------------------------------------------------------------------------

def attn_projection_forward(x, kp, num_heads):
    B, N, Cin = x.shape
    C4 = kp["w_k1"].shape[1]
    Cout = C4 // 4
    head_dim = Cout // num_heads
    M = B * N
    Mp = ((M + 7) // 8) * 8              # pad rows so row tiling / pipelining always engages
    x2 = x.reshape(M, Cin)
    if Mp != M:
        x2 = jnp.pad(x2, ((0, Mp - M), (0, 0)))

    # K1: slab = [ proj(norm3(x)) | qkv_linear(norm1(x)) ]   (one lane-dense write)
    slab = fused_ln_proj_qkv(x2, kp)
    slab = slab[:M].reshape(B, N, C4)

    # K2: out = y + GeGluMlp(norm2(y)),  y = branch1 + attn_proj(causal_attention(qkv))
    return fused_attn_geglu(slab, kp, num_heads, head_dim)


# ---------------------------------------------------------------------------
# Parameter construction (PyTorch layout) and one-time kernel-layout prep
# ---------------------------------------------------------------------------

def make_params(key, in_dim, out_dim, num_heads, mlp_ratio=2):
    hidden = int(out_dim * mlp_ratio)
    keys = jax.random.split(key, 16)
    n = lambda k, shape, s=0.02: (s * jax.random.normal(k, shape)).astype(jnp.float32)
    return {
        "norm1_g": jnp.ones((in_dim,), jnp.float32) + n(keys[0], (in_dim,)),
        "norm1_b": n(keys[1], (in_dim,)),
        "norm3_g": jnp.ones((in_dim,), jnp.float32) + n(keys[2], (in_dim,)),
        "norm3_b": n(keys[3], (in_dim,)),
        "norm2_g": jnp.ones((out_dim,), jnp.float32) + n(keys[4], (out_dim,)),
        "norm2_b": n(keys[5], (out_dim,)),
        "proj_w": n(keys[6], (out_dim, in_dim)),
        "proj_b": n(keys[7], (out_dim,)),
        "qkv_w": n(keys[8], (3 * out_dim, in_dim)),
        "q_bias": n(keys[9], (out_dim,)),
        "v_bias": n(keys[10], (out_dim,)),
        "attn_proj_w": n(keys[11], (out_dim, out_dim)),
        "attn_proj_b": n(keys[12], (out_dim,)),
        "mlp_norm_g": jnp.ones((out_dim,), jnp.float32),
        "mlp_norm_b": jnp.zeros((out_dim,), jnp.float32),
        "w0_w": n(keys[13], (hidden, out_dim)),
        "w0_b": jnp.zeros((hidden,), jnp.float32),
        "w1_w": n(keys[14], (hidden, out_dim)),
        "w1_b": jnp.zeros((hidden,), jnp.float32),
        "w2_w": n(keys[15], (out_dim, hidden)),
        "w2_b": jnp.zeros((out_dim,), jnp.float32),
    }


def prepare_kernel_params(p):
    """One-time prep: transpose weights, fold LN affines into downstream weights,
    concatenate [proj|qkv] and [w0|w1], cast all MXU weight operands to bf16."""
    f32, bf16 = jnp.float32, jnp.bfloat16
    Cout = p["proj_w"].shape[0]
    H = p["w0_w"].shape[0]
    qkv_b = jnp.concatenate([p["q_bias"], jnp.zeros_like(p["q_bias"]), p["v_bias"]])

    # K1: (xn*g+b) @ W  ==  xn @ (diag(g) W)  +  (b @ W);  then concat proj|qkv.
    wp_t = p["proj_w"].T.astype(f32)                            # (Cin, Cout)
    wq_t = p["qkv_w"].T.astype(f32)                             # (Cin, 3*Cout)
    w_k1 = jnp.concatenate([p["norm3_g"][:, None] * wp_t,
                            p["norm1_g"][:, None] * wq_t], axis=1)
    b_k1 = jnp.concatenate([p["norm3_b"] @ wp_t + p["proj_b"],
                            p["norm1_b"] @ wq_t + qkv_b])

    # K2: fold mlp_norm affine into w0/w1 and concat into one (Cout, 2H) matrix.
    w0_t = p["w0_w"].T.astype(f32)                              # (Cout, H)
    w1_t = p["w1_w"].T.astype(f32)
    w01 = jnp.concatenate([p["mlp_norm_g"][:, None] * w0_t,
                           p["mlp_norm_g"][:, None] * w1_t], axis=1)
    b01 = jnp.concatenate([p["mlp_norm_b"] @ w0_t + p["w0_b"],
                           p["mlp_norm_b"] @ w1_t + p["w1_b"]])

    return {
        "w_k1": w_k1.astype(bf16),                              # (Cin, 4*Cout)
        "b_k1": b_k1.reshape(1, 4 * Cout).astype(f32),
        "attn_proj_wt": p["attn_proj_w"].T.astype(bf16),        # (Cout, Cout)
        "attn_proj_b": p["attn_proj_b"].reshape(1, Cout).astype(f32),
        "norm2_g": p["norm2_g"].reshape(1, Cout).astype(f32),
        "norm2_b": p["norm2_b"].reshape(1, Cout).astype(f32),
        "w01_t": w01.astype(bf16),                              # (Cout, 2H)
        "b01": b01.reshape(1, 2 * H).astype(f32),
        "w2_t": p["w2_w"].T.astype(bf16),                       # (H, Cout)
        "w2_b": p["w2_b"].reshape(1, Cout).astype(f32),
    }


# ---------------------------------------------------------------------------
# Pure-JAX reference (for correctness check)
# ---------------------------------------------------------------------------

def _ln_ref(x, g, b, eps):
    mu = x.mean(-1, keepdims=True)
    var = ((x - mu) ** 2).mean(-1, keepdims=True)
    return (x - mu) / jnp.sqrt(var + eps) * g + b


def reference_forward(x, p, num_heads):
    B, N, Cin = x.shape
    Cout = p["proj_w"].shape[0]
    head_dim = Cout // num_heads

    branch1 = _ln_ref(x, p["norm3_g"], p["norm3_b"], 1e-5) @ p["proj_w"].T + p["proj_b"]

    h1 = _ln_ref(x, p["norm1_g"], p["norm1_b"], 1e-5)
    qkv_bias = jnp.concatenate([p["q_bias"], jnp.zeros_like(p["q_bias"]), p["v_bias"]])
    qkv = h1 @ p["qkv_w"].T + qkv_bias
    qkv = qkv.reshape(B, N, 3, num_heads, head_dim).transpose(2, 0, 3, 1, 4)
    q, k, v = qkv[0], qkv[1], qkv[2]
    s = jnp.einsum("bhqd,bhkd->bhqk", q, k) / math.sqrt(head_dim)
    mask = jnp.tril(jnp.ones((N, N), dtype=bool))
    s = jnp.where(mask, s, -jnp.inf)
    pattn = jax.nn.softmax(s, axis=-1)
    a = jnp.einsum("bhqk,bhkd->bhqd", pattn, v)
    a = a.transpose(0, 2, 1, 3).reshape(B, N, Cout)
    branch2 = a @ p["attn_proj_w"].T + p["attn_proj_b"]

    y = branch1 + branch2

    h2 = _ln_ref(y, p["norm2_g"], p["norm2_b"], 1e-5)
    hm = _ln_ref(h2, p["mlp_norm_g"], p["mlp_norm_b"], 1e-6)
    g0 = hm @ p["w0_w"].T + p["w0_b"]
    g1 = hm @ p["w1_w"].T + p["w1_b"]
    c = math.sqrt(2.0 / math.pi)
    gelu = 0.5 * g0 * (1.0 + jnp.tanh(c * (g0 + 0.044715 * g0 ** 3)))
    m = (gelu * g1) @ p["w2_w"].T + p["w2_b"]
    return y + m


# ---------------------------------------------------------------------------
# main
# ---------------------------------------------------------------------------

if __name__ == "__main__":
    B, N = 2, 8
    # out_dim chosen as a multiple of 128 so every HBM store is lane-dense (unmasked vst).
    in_dim, out_dim, num_heads = 64, 128, 4

    key = jax.random.PRNGKey(0)
    kx, kparam = jax.random.split(key)
    x = jax.random.normal(kx, (B, N, in_dim), dtype=jnp.float32)
    params = make_params(kparam, in_dim, out_dim, num_heads)
    kparams = prepare_kernel_params(params)          # one-time weight layout / bf16 prep

    fwd = jax.jit(partial(attn_projection_forward, num_heads=num_heads))
    out = jax.block_until_ready(fwd(x, kparams))

    ref = reference_forward(x, params, num_heads)
    assert out.shape == (B, N, out_dim)
    max_err = float(jnp.max(jnp.abs(out - ref)))
    # bf16 MXU weight operands (f32 accumulation) relax bit-parity vs the f32 reference.
    assert jnp.allclose(out, ref, atol=2e-2, rtol=2e-2), max_err

    print("KERNEL_OK")
</pallas_src>

<mosaic_0001>
module attributes {stable_mosaic.version = 11 : i64} {
  func.func @_ln_fused_matmul_kernel(%arg0: i32, %arg1: memref<8x64xf32, #tpu.memory_space<vmem>>, %arg2: memref<64x512xbf16, #tpu.memory_space<vmem>>, %arg3: memref<1x512xf32, #tpu.memory_space<vmem>>, %arg4: memref<8x512xf32, #tpu.memory_space<vmem>>) attributes {dimension_semantics = [#tpu.dimension_semantics<parallel>], iteration_bounds = array<i64: 2>, scalar_prefetch = 0 : i64, scratch_operands = 0 : i64, tpu.core_type = #tpu.core_type<tc>, window_params = [{transform_indices = @transform_0, window_bounds = array<i64: 8, 64>}, {pipeline_mode = #tpu.pipeline_mode<synchronous>, transform_indices = @transform_1, window_bounds = array<i64: 64, 512>}, {pipeline_mode = #tpu.pipeline_mode<synchronous>, transform_indices = @transform_2, window_bounds = array<i64: 1, 512>}, {transform_indices = @transform_3, window_bounds = array<i64: 8, 512>}]} {
    %c0 = arith.constant 0 : index
    %c0_0 = arith.constant 0 : index
    %0 = vector.load %arg1[%c0, %c0_0] : memref<8x64xf32, #tpu.memory_space<vmem>>, vector<8x64xf32>
    %cst = arith.constant dense<0.000000e+00> : vector<8xf32>
    %1 = vector.multi_reduction <add>, %0, %cst [1] : vector<8x64xf32> to vector<8xf32>
    %2 = vector.shape_cast %1 : vector<8xf32> to vector<8x1xf32>
    %cst_1 = arith.constant 6.400000e+01 : f32
    %3 = vector.broadcast %cst_1 : f32 to vector<8x1xf32>
    %4 = arith.divf %2, %3 : vector<8x1xf32>
    %5 = vector.broadcast %4 : vector<8x1xf32> to vector<8x64xf32>
    %6 = arith.subf %0, %5 : vector<8x64xf32>
    %7 = arith.mulf %6, %6 : vector<8x64xf32>
    %cst_2 = arith.constant dense<0.000000e+00> : vector<8xf32>
    %8 = vector.multi_reduction <add>, %7, %cst_2 [1] : vector<8x64xf32> to vector<8xf32>
    %9 = vector.shape_cast %8 : vector<8xf32> to vector<8x1xf32>
    %cst_3 = arith.constant 6.400000e+01 : f32
    %10 = vector.broadcast %cst_3 : f32 to vector<8x1xf32>
    %11 = arith.divf %9, %10 : vector<8x1xf32>
    %12 = vector.broadcast %4 : vector<8x1xf32> to vector<8x64xf32>
    %13 = arith.subf %0, %12 : vector<8x64xf32>
    %cst_4 = arith.constant 9.99999974E-6 : f32
    %14 = vector.broadcast %cst_4 : f32 to vector<8x1xf32>
    %15 = arith.addf %11, %14 : vector<8x1xf32>
    %16 = math.rsqrt %15 : vector<8x1xf32>
    %17 = vector.broadcast %16 : vector<8x1xf32> to vector<8x64xf32>
    %18 = arith.mulf %13, %17 : vector<8x64xf32>
    %19 = arith.truncf %18 : vector<8x64xf32> to vector<8x64xbf16>
    %c0_5 = arith.constant 0 : index
    %c0_6 = arith.constant 0 : index
    %20 = vector.load %arg2[%c0_5, %c0_6] : memref<64x512xbf16, #tpu.memory_space<vmem>>, vector<64x512xbf16>
    %cst_7 = arith.constant dense<0.000000e+00> : vector<8x512xf32>
    %21 = tpu.matmul %19, %20, %cst_7 {dimension_numbers = #tpu.dot_dimension_numbers<[1], [0], [0], [1], [0, 0, 1, 1], [], []>} : vector<8x64xbf16>, vector<64x512xbf16>, vector<8x512xf32> -> vector<8x512xf32>
    %c0_8 = arith.constant 0 : index
    %c0_9 = arith.constant 0 : index
    %22 = vector.load %arg3[%c0_8, %c0_9] : memref<1x512xf32, #tpu.memory_space<vmem>>, vector<1x512xf32>
    %23 = vector.broadcast %22 : vector<1x512xf32> to vector<8x512xf32>
    %24 = arith.addf %21, %23 : vector<8x512xf32>
    %c0_10 = arith.constant 0 : index
    %c0_11 = arith.constant 0 : index
    %25 = vector.load %arg4[%c0_10, %c0_11] : memref<8x512xf32, #tpu.memory_space<vmem>>, vector<8x512xf32>
    tpu.vector_store %arg4[%c0_10, %c0_11], %24 {strides = array<i32>} : memref<8x512xf32, #tpu.memory_space<vmem>>, vector<8x512xf32>,
    return
  }
  func.func @transform_0(%arg0: i32) -> (i32, i32) {
    %c0_i32 = arith.constant 0 : i32
    %c0_i32_0 = arith.constant 0 : i32
    return %arg0, %c0_i32 : i32, i32
  }
  func.func @transform_1(%arg0: i32) -> (i32, i32) {
    %c0_i32 = arith.constant 0 : i32
    %c0_i32_0 = arith.constant 0 : i32
    %c0_i32_1 = arith.constant 0 : i32
    return %c0_i32, %c0_i32_0 : i32, i32
  }
  func.func @transform_2(%arg0: i32) -> (i32, i32) {
    %c0_i32 = arith.constant 0 : i32
    %c0_i32_0 = arith.constant 0 : i32
    %c0_i32_1 = arith.constant 0 : i32
    return %c0_i32, %c0_i32_0 : i32, i32
  }
  func.func @transform_3(%arg0: i32) -> (i32, i32) {
    %c0_i32 = arith.constant 0 : i32
    %c0_i32_0 = arith.constant 0 : i32
    return %arg0, %c0_i32 : i32, i32
  }
}

module attributes {stable_mosaic.version = 11 : i64} {
  func.func @_attn_geglu_kernel(%arg0: i32, %arg1: memref<1x8x512xf32, #tpu.memory_space<vmem>>, %arg2: memref<128x128xbf16, #tpu.memory_space<vmem>>, %arg3: memref<1x128xf32, #tpu.memory_space<vmem>>, %arg4: memref<1x128xf32, #tpu.memory_space<vmem>>, %arg5: memref<1x128xf32, #tpu.memory_space<vmem>>, %arg6: memref<128x512xbf16, #tpu.memory_space<vmem>>, %arg7: memref<1x512xf32, #tpu.memory_space<vmem>>, %arg8: memref<256x128xbf16, #tpu.memory_space<vmem>>, %arg9: memref<1x128xf32, #tpu.memory_space<vmem>>, %arg10: memref<1x8x128xf32, #tpu.memory_space<vmem>>, %arg11: memref<8x128xf32, #tpu.memory_space<vmem>>) attributes {dimension_semantics = [#tpu.dimension_semantics<parallel>], iteration_bounds = array<i64: 2>, scalar_prefetch = 0 : i64, scratch_operands = 1 : i64, tpu.core_type = #tpu.core_type<tc>, window_params = [{transform_indices = @transform_0, window_bounds = array<i64: 1, 8, 512>}, {pipeline_mode = #tpu.pipeline_mode<synchronous>, transform_indices = @transform_1, window_bounds = array<i64: 128, 128>}, {pipeline_mode = #tpu.pipeline_mode<synchronous>, transform_indices = @transform_2, window_bounds = array<i64: 1, 128>}, {pipeline_mode = #tpu.pipeline_mode<synchronous>, transform_indices = @transform_3, window_bounds = array<i64: 1, 128>}, {pipeline_mode = #tpu.pipeline_mode<synchronous>, transform_indices = @transform_4, window_bounds = array<i64: 1, 128>}, {pipeline_mode = #tpu.pipeline_mode<synchronous>, transform_indices = @transform_5, window_bounds = array<i64: 128, 512>}, {pipeline_mode = #tpu.pipeline_mode<synchronous>, transform_indices = @transform_6, window_bounds = array<i64: 1, 512>}, {pipeline_mode = #tpu.pipeline_mode<synchronous>, transform_indices = @transform_7, window_bounds = array<i64: 256, 128>}, {pipeline_mode = #tpu.pipeline_mode<synchronous>, transform_indices = @transform_8, window_bounds = array<i64: 1, 128>}, {transform_indices = @transform_9, window_bounds = array<i64: 1, 8, 128>}]} {
    %c0 = arith.constant 0 : index
    %c0_0 = arith.constant 0 : index
    %c0_1 = arith.constant 0 : index
    %0 = vector.load %arg1[%c0, %c0_0, %c0_1] : memref<1x8x512xf32, #tpu.memory_space<vmem>>, vector<1x8x512xf32>
    %1 = vector.shape_cast %0 : vector<1x8x512xf32> to vector<8x512xf32>
    %2 = vector.extract_strided_slice %1 {offsets = [0, 0], sizes = [8, 128], strides = [1, 1]} : vector<8x512xf32> to vector<8x128xf32>
    %3 = vector.extract_strided_slice %1 {offsets = [0, 128], sizes = [8, 384], strides = [1, 1]} : vector<8x512xf32> to vector<8x384xf32>
    %4 = tpu.iota {dimensions = array<i32: 0>} : vector<8x8xi32>
    %5 = tpu.iota {dimensions = array<i32: 1>} : vector<8x8xi32>
    %6 = arith.cmpi sle, %5, %4 : vector<8x8xi32>
    %7 = vector.extract_strided_slice %3 {offsets = [0, 0], sizes = [8, 32], strides = [1, 1]} : vector<8x384xf32> to vector<8x32xf32>
    %8 = vector.extract_strided_slice %3 {offsets = [0, 128], sizes = [8, 32], strides = [1, 1]} : vector<8x384xf32> to vector<8x32xf32>
    %9 = vector.extract_strided_slice %3 {offsets = [0, 256], sizes = [8, 32], strides = [1, 1]} : vector<8x384xf32> to vector<8x32xf32>
    %10 = tpu.transpose %8, [1, 0] : vector<8x32xf32> -> vector<32x8xf32>
    %cst = arith.constant dense<0.000000e+00> : vector<8x8xf32>
    %11 = tpu.matmul %7, %10, %cst {dimension_numbers = #tpu.dot_dimension_numbers<[1], [0], [0], [1], [0, 0, 1, 1], [], []>} : vector<8x32xf32>, vector<32x8xf32>, vector<8x8xf32> -> vector<8x8xf32>
    %cst_2 = arith.constant 0.176776692 : f32
    %12 = vector.broadcast %cst_2 : f32 to vector<8x8xf32>
    %13 = arith.mulf %11, %12 : vector<8x8xf32>
    %cst_3 = arith.constant -1.000000e+30 : f32
    %14 = vector.broadcast %cst_3 : f32 to vector<8x8xf32>
    %15 = arith.select %6, %13, %14 : vector<8x8xi1>, vector<8x8xf32>
    %cst_4 = arith.constant dense<0xFF800000> : vector<8xf32>
    %16 = vector.multi_reduction <maximumf>, %15, %cst_4 [1] : vector<8x8xf32> to vector<8xf32>
    %17 = vector.shape_cast %16 : vector<8xf32> to vector<8x1xf32>
    %18 = vector.broadcast %17 : vector<8x1xf32> to vector<8x8xf32>
    %19 = arith.subf %15, %18 : vector<8x8xf32>
    %20 = math.exp %19 : vector<8x8xf32>
    %cst_5 = arith.constant dense<0.000000e+00> : vector<8xf32>
    %21 = vector.multi_reduction <add>, %20, %cst_5 [1] : vector<8x8xf32> to vector<8xf32>
    %22 = vector.shape_cast %21 : vector<8xf32> to vector<8x1xf32>
    %23 = vector.broadcast %22 : vector<8x1xf32> to vector<8x8xf32>
    %24 = arith.divf %20, %23 : vector<8x8xf32>
    %cst_6 = arith.constant dense<0.000000e+00> : vector<8x32xf32>
    %25 = tpu.matmul %24, %9, %cst_6 {dimension_numbers = #tpu.dot_dimension_numbers<[1], [0], [0], [1], [0, 0, 1, 1], [], []>} : vector<8x8xf32>, vector<8x32xf32>, vector<8x32xf32> -> vector<8x32xf32>
    %c0_7 = arith.constant 0 : index
    %c0_8 = arith.constant 0 : index
    %26 = vector.load %arg11[%c0_7, %c0_8] : memref<8x128xf32, #tpu.memory_space<vmem>>, vector<8x32xf32>
    tpu.vector_store %arg11[%c0_7, %c0_8], %25 {strides = array<i32>} : memref<8x128xf32, #tpu.memory_space<vmem>>, vector<8x32xf32>,
    %27 = vector.extract_strided_slice %3 {offsets = [0, 32], sizes = [8, 32], strides = [1, 1]} : vector<8x384xf32> to vector<8x32xf32>
    %28 = vector.extract_strided_slice %3 {offsets = [0, 160], sizes = [8, 32], strides = [1, 1]} : vector<8x384xf32> to vector<8x32xf32>
    %29 = vector.extract_strided_slice %3 {offsets = [0, 288], sizes = [8, 32], strides = [1, 1]} : vector<8x384xf32> to vector<8x32xf32>
    %30 = tpu.transpose %28, [1, 0] : vector<8x32xf32> -> vector<32x8xf32>
    %cst_9 = arith.constant dense<0.000000e+00> : vector<8x8xf32>
    %31 = tpu.matmul %27, %30, %cst_9 {dimension_numbers = #tpu.dot_dimension_numbers<[1], [0], [0], [1], [0, 0, 1, 1], [], []>} : vector<8x32xf32>, vector<32x8xf32>, vector<8x8xf32> -> vector<8x8xf32>
    %cst_10 = arith.constant 0.176776692 : f32
    %32 = vector.broadcast %cst_10 : f32 to vector<8x8xf32>
    %33 = arith.mulf %31, %32 : vector<8x8xf32>
    %cst_11 = arith.constant -1.000000e+30 : f32
    %34 = vector.broadcast %cst_11 : f32 to vector<8x8xf32>
    %35 = arith.select %6, %33, %34 : vector<8x8xi1>, vector<8x8xf32>
    %cst_12 = arith.constant dense<0xFF800000> : vector<8xf32>
    %36 = vector.multi_reduction <maximumf>, %35, %cst_12 [1] : vector<8x8xf32> to vector<8xf32>
    %37 = vector.shape_cast %36 : vector<8xf32> to vector<8x1xf32>
    %38 = vector.broadcast %37 : vector<8x1xf32> to vector<8x8xf32>
    %39 = arith.subf %35, %38 : vector<8x8xf32>
    %40 = math.exp %39 : vector<8x8xf32>
    %cst_13 = arith.constant dense<0.000000e+00> : vector<8xf32>
    %41 = vector.multi_reduction <add>, %40, %cst_13 [1] : vector<8x8xf32> to vector<8xf32>
    %42 = vector.shape_cast %41 : vector<8xf32> to vector<8x1xf32>
    %43 = vector.broadcast %42 : vector<8x1xf32> to vector<8x8xf32>
    %44 = arith.divf %40, %43 : vector<8x8xf32>
    %cst_14 = arith.constant dense<0.000000e+00> : vector<8x32xf32>
    %45 = tpu.matmul %44, %29, %cst_14 {dimension_numbers = #tpu.dot_dimension_numbers<[1], [0], [0], [1], [0, 0, 1, 1], [], []>} : vector<8x8xf32>, vector<8x32xf32>, vector<8x32xf32> -> vector<8x32xf32>
    %c0_15 = arith.constant 0 : index
    %c32 = arith.constant 32 : index
    %46 = vector.load %arg11[%c0_15, %c32] : memref<8x128xf32, #tpu.memory_space<vmem>>, vector<8x32xf32>
    tpu.vector_store %arg11[%c0_15, %c32], %45 {strides = array<i32>} : memref<8x128xf32, #tpu.memory_space<vmem>>, vector<8x32xf32>,
    %47 = vector.extract_strided_slice %3 {offsets = [0, 64], sizes = [8, 32], strides = [1, 1]} : vector<8x384xf32> to vector<8x32xf32>
    %48 = vector.extract_strided_slice %3 {offsets = [0, 192], sizes = [8, 32], strides = [1, 1]} : vector<8x384xf32> to vector<8x32xf32>
    %49 = vector.extract_strided_slice %3 {offsets = [0, 320], sizes = [8, 32], strides = [1, 1]} : vector<8x384xf32> to vector<8x32xf32>
    %50 = tpu.transpose %48, [1, 0] : vector<8x32xf32> -> vector<32x8xf32>
    %cst_16 = arith.constant dense<0.000000e+00> : vector<8x8xf32>
    %51 = tpu.matmul %47, %50, %cst_16 {dimension_numbers = #tpu.dot_dimension_numbers<[1], [0], [0], [1], [0, 0, 1, 1], [], []>} : vector<8x32xf32>, vector<32x8xf32>, vector<8x8xf32> -> vector<8x8xf32>
    %cst_17 = arith.constant 0.176776692 : f32
    %52 = vector.broadcast %cst_17 : f32 to vector<8x8xf32>
    %53 = arith.mulf %51, %52 : vector<8x8xf32>
    %cst_18 = arith.constant -1.000000e+30 : f32
    %54 = vector.broadcast %cst_18 : f32 to vector<8x8xf32>
    %55 = arith.select %6, %53, %54 : vector<8x8xi1>, vector<8x8xf32>
    %cst_19 = arith.constant dense<0xFF800000> : vector<8xf32>
    %56 = vector.multi_reduction <maximumf>, %55, %cst_19 [1] : vector<8x8xf32> to vector<8xf32>
    %57 = vector.shape_cast %56 : vector<8xf32> to vector<8x1xf32>
    %58 = vector.broadcast %57 : vector<8x1xf32> to vector<8x8xf32>
    %59 = arith.subf %55, %58 : vector<8x8xf32>
    %60 = math.exp %59 : vector<8x8xf32>
    %cst_20 = arith.constant dense<0.000000e+00> : vector<8xf32>
    %61 = vector.multi_reduction <add>, %60, %cst_20 [1] : vector<8x8xf32> to vector<8xf32>
    %62 = vector.shape_cast %61 : vector<8xf32> to vector<8x1xf32>
    %63 = vector.broadcast %62 : vector<8x1xf32> to vector<8x8xf32>
    %64 = arith.divf %60, %63 : vector<8x8xf32>
    %cst_21 = arith.constant dense<0.000000e+00> : vector<8x32xf32>
    %65 = tpu.matmul %64, %49, %cst_21 {dimension_numbers = #tpu.dot_dimension_numbers<[1], [0], [0], [1], [0, 0, 1, 1], [], []>} : vector<8x8xf32>, vector<8x32xf32>, vector<8x32xf32> -> vector<8x32xf32>
    %c0_22 = arith.constant 0 : index
    %c64 = arith.constant 64 : index
    %66 = vector.load %arg11[%c0_22, %c64] : memref<8x128xf32, #tpu.memory_space<vmem>>, vector<8x32xf32>
    tpu.vector_store %arg11[%c0_22, %c64], %65 {strides = array<i32>} : memref<8x128xf32, #tpu.memory_space<vmem>>, vector<8x32xf32>,
    %67 = vector.extract_strided_slice %3 {offsets = [0, 96], sizes = [8, 32], strides = [1, 1]} : vector<8x384xf32> to vector<8x32xf32>
    %68 = vector.extract_strided_slice %3 {offsets = [0, 224], sizes = [8, 32], strides = [1, 1]} : vector<8x384xf32> to vector<8x32xf32>
    %69 = vector.extract_strided_slice %3 {offsets = [0, 352], sizes = [8, 32], strides = [1, 1]} : vector<8x384xf32> to vector<8x32xf32>
    %70 = tpu.transpose %68, [1, 0] : vector<8x32xf32> -> vector<32x8xf32>
    %cst_23 = arith.constant dense<0.000000e+00> : vector<8x8xf32>
    %71 = tpu.matmul %67, %70, %cst_23 {dimension_numbers = #tpu.dot_dimension_numbers<[1], [0], [0], [1], [0, 0, 1, 1], [], []>} : vector<8x32xf32>, vector<32x8xf32>, vector<8x8xf32> -> vector<8x8xf32>
    %cst_24 = arith.constant 0.176776692 : f32
    %72 = vector.broadcast %cst_24 : f32 to vector<8x8xf32>
    %73 = arith.mulf %71, %72 : vector<8x8xf32>
    %cst_25 = arith.constant -1.000000e+30 : f32
    %74 = vector.broadcast %cst_25 : f32 to vector<8x8xf32>
    %75 = arith.select %6, %73, %74 : vector<8x8xi1>, vector<8x8xf32>
    %cst_26 = arith.constant dense<0xFF800000> : vector<8xf32>
    %76 = vector.multi_reduction <maximumf>, %75, %cst_26 [1] : vector<8x8xf32> to vector<8xf32>
    %77 = vector.shape_cast %76 : vector<8xf32> to vector<8x1xf32>
    %78 = vector.broadcast %77 : vector<8x1xf32> to vector<8x8xf32>
    %79 = arith.subf %75, %78 : vector<8x8xf32>
    %80 = math.exp %79 : vector<8x8xf32>
    %cst_27 = arith.constant dense<0.000000e+00> : vector<8xf32>
    %81 = vector.multi_reduction <add>, %80, %cst_27 [1] : vector<8x8xf32> to vector<8xf32>
    %82 = vector.shape_cast %81 : vector<8xf32> to vector<8x1xf32>
    %83 = vector.broadcast %82 : vector<8x1xf32> to vector<8x8xf32>
    %84 = arith.divf %80, %83 : vector<8x8xf32>
    %cst_28 = arith.constant dense<0.000000e+00> : vector<8x32xf32>
    %85 = tpu.matmul %84, %69, %cst_28 {dimension_numbers = #tpu.dot_dimension_numbers<[1], [0], [0], [1], [0, 0, 1, 1], [], []>} : vector<8x8xf32>, vector<8x32xf32>, vector<8x32xf32> -> vector<8x32xf32>
    %c0_29 = arith.constant 0 : index
    %c96 = arith.constant 96 : index
    %86 = vector.load %arg11[%c0_29, %c96] : memref<8x128xf32, #tpu.memory_space<vmem>>, vector<8x32xf32>
    tpu.vector_store %arg11[%c0_29, %c96], %85 {strides = array<i32>} : memref<8x128xf32, #tpu.memory_space<vmem>>, vector<8x32xf32>,
    %c0_30 = arith.constant 0 : index
    %c0_31 = arith.constant 0 : index
    %87 = vector.load %arg11[%c0_30, %c0_31] : memref<8x128xf32, #tpu.memory_space<vmem>>, vector<8x128xf32>
    %88 = arith.truncf %87 : vector<8x128xf32> to vector<8x128xbf16>
    %c0_32 = arith.constant 0 : index
    %c0_33 = arith.constant 0 : index
    %89 = vector.load %arg2[%c0_32, %c0_33] : memref<128x128xbf16, #tpu.memory_space<vmem>>, vector<128x128xbf16>
    %cst_34 = arith.constant dense<0.000000e+00> : vector<8x128xf32>
    %90 = tpu.matmul %88, %89, %cst_34 {dimension_numbers = #tpu.dot_dimension_numbers<[1], [0], [0], [1], [0, 0, 1, 1], [], []>} : vector<8x128xbf16>, vector<128x128xbf16>, vector<8x128xf32> -> vector<8x128xf32>
    %c0_35 = arith.constant 0 : index
    %c0_36 = arith.constant 0 : index
    %91 = vector.load %arg3[%c0_35, %c0_36] : memref<1x128xf32, #tpu.memory_space<vmem>>, vector<1x128xf32>
    %92 = vector.broadcast %91 : vector<1x128xf32> to vector<8x128xf32>
    %93 = arith.addf %90, %92 : vector<8x128xf32>
    %94 = arith.addf %2, %93 : vector<8x128xf32>
    %cst_37 = arith.constant dense<0.000000e+00> : vector<8xf32>
    %95 = vector.multi_reduction <add>, %94, %cst_37 [1] : vector<8x128xf32> to vector<8xf32>
    %96 = vector.shape_cast %95 : vector<8xf32> to vector<8x1xf32>
    %cst_38 = arith.constant 1.280000e+02 : f32
    %97 = vector.broadcast %cst_38 : f32 to vector<8x1xf32>
    %98 = arith.divf %96, %97 : vector<8x1xf32>
    %99 = vector.broadcast %98 : vector<8x1xf32> to vector<8x128xf32>
    %100 = arith.subf %94, %99 : vector<8x128xf32>
    %101 = arith.mulf %100, %100 : vector<8x128xf32>
    %cst_39 = arith.constant dense<0.000000e+00> : vector<8xf32>
    %102 = vector.multi_reduction <add>, %101, %cst_39 [1] : vector<8x128xf32> to vector<8xf32>
    %103 = vector.shape_cast %102 : vector<8xf32> to vector<8x1xf32>
    %cst_40 = arith.constant 1.280000e+02 : f32
    %104 = vector.broadcast %cst_40 : f32 to vector<8x1xf32>
    %105 = arith.divf %103, %104 : vector<8x1xf32>
    %106 = vector.broadcast %98 : vector<8x1xf32> to vector<8x128xf32>
    %107 = arith.subf %94, %106 : vector<8x128xf32>
    %cst_41 = arith.constant 9.99999974E-6 : f32
    %108 = vector.broadcast %cst_41 : f32 to vector<8x1xf32>
    %109 = arith.addf %105, %108 : vector<8x1xf32>
    %110 = math.rsqrt %109 : vector<8x1xf32>
    %111 = vector.broadcast %110 : vector<8x1xf32> to vector<8x128xf32>
    %112 = arith.mulf %107, %111 : vector<8x128xf32>
    %c0_42 = arith.constant 0 : index
    %c0_43 = arith.constant 0 : index
    %113 = vector.load %arg4[%c0_42, %c0_43] : memref<1x128xf32, #tpu.memory_space<vmem>>, vector<1x128xf32>
    %114 = vector.broadcast %113 : vector<1x128xf32> to vector<8x128xf32>
    %115 = arith.mulf %112, %114 : vector<8x128xf32>
    %c0_44 = arith.constant 0 : index
    %c0_45 = arith.constant 0 : index
    %116 = vector.load %arg5[%c0_44, %c0_45] : memref<1x128xf32, #tpu.memory_space<vmem>>, vector<1x128xf32>
    %117 = vector.broadcast %116 : vector<1x128xf32> to vector<8x128xf32>
    %118 = arith.addf %115, %117 : vector<8x128xf32>
    %cst_46 = arith.constant dense<0.000000e+00> : vector<8xf32>
    %119 = vector.multi_reduction <add>, %118, %cst_46 [1] : vector<8x128xf32> to vector<8xf32>
    %120 = vector.shape_cast %119 : vector<8xf32> to vector<8x1xf32>
    %cst_47 = arith.constant 1.280000e+02 : f32
    %121 = vector.broadcast %cst_47 : f32 to vector<8x1xf32>
    %122 = arith.divf %120, %121 : vector<8x1xf32>
    %123 = vector.broadcast %122 : vector<8x1xf32> to vector<8x128xf32>
    %124 = arith.subf %118, %123 : vector<8x128xf32>
    %125 = arith.mulf %124, %124 : vector<8x128xf32>
    %cst_48 = arith.constant dense<0.000000e+00> : vector<8xf32>
    %126 = vector.multi_reduction <add>, %125, %cst_48 [1] : vector<8x128xf32> to vector<8xf32>
    %127 = vector.shape_cast %126 : vector<8xf32> to vector<8x1xf32>
    %cst_49 = arith.constant 1.280000e+02 : f32
    %128 = vector.broadcast %cst_49 : f32 to vector<8x1xf32>
    %129 = arith.divf %127, %128 : vector<8x1xf32>
    %130 = vector.broadcast %122 : vector<8x1xf32> to vector<8x128xf32>
    %131 = arith.subf %118, %130 : vector<8x128xf32>
    %cst_50 = arith.constant 9.99999997E-7 : f32
    %132 = vector.broadcast %cst_50 : f32 to vector<8x1xf32>
    %133 = arith.addf %129, %132 : vector<8x1xf32>
    %134 = math.rsqrt %133 : vector<8x1xf32>
    %135 = vector.broadcast %134 : vector<8x1xf32> to vector<8x128xf32>
    %136 = arith.mulf %131, %135 : vector<8x128xf32>
    %137 = arith.truncf %136 : vector<8x128xf32> to vector<8x128xbf16>
    %c0_51 = arith.constant 0 : index
    %c0_52 = arith.constant 0 : index
    %138 = vector.load %arg6[%c0_51, %c0_52] : memref<128x512xbf16, #tpu.memory_space<vmem>>, vector<128x512xbf16>
    %cst_53 = arith.constant dense<0.000000e+00> : vector<8x512xf32>
    %139 = tpu.matmul %137, %138, %cst_53 {dimension_numbers = #tpu.dot_dimension_numbers<[1], [0], [0], [1], [0, 0, 1, 1], [], []>} : vector<8x128xbf16>, vector<128x512xbf16>, vector<8x512xf32> -> vector<8x512xf32>
    %c0_54 = arith.constant 0 : index
    %c0_55 = arith.constant 0 : index
    %140 = vector.load %arg7[%c0_54, %c0_55] : memref<1x512xf32, #tpu.memory_space<vmem>>, vector<1x512xf32>
    %141 = vector.broadcast %140 : vector<1x512xf32> to vector<8x512xf32>
    %142 = arith.addf %139, %141 : vector<8x512xf32>
    %143 = vector.extract_strided_slice %142 {offsets = [0, 0], sizes = [8, 256], strides = [1, 1]} : vector<8x512xf32> to vector<8x256xf32>
    %cst_56 = arith.constant 5.000000e-01 : f32
    %144 = vector.broadcast %cst_56 : f32 to vector<8x256xf32>
    %145 = arith.mulf %144, %143 : vector<8x256xf32>
    %cst_57 = arith.constant 4.471500e-02 : f32
    %146 = vector.broadcast %cst_57 : f32 to vector<8x256xf32>
    %147 = arith.mulf %146, %143 : vector<8x256xf32>
    %148 = arith.mulf %147, %143 : vector<8x256xf32>
    %149 = arith.mulf %148, %143 : vector<8x256xf32>
    %150 = arith.addf %143, %149 : vector<8x256xf32>
    %cst_58 = arith.constant 0.797884583 : f32
    %151 = vector.broadcast %cst_58 : f32 to vector<8x256xf32>
    %152 = arith.mulf %151, %150 : vector<8x256xf32>
    %153 = math.tanh %152 : vector<8x256xf32>
    %cst_59 = arith.constant 1.000000e+00 : f32
    %154 = vector.broadcast %cst_59 : f32 to vector<8x256xf32>
    %155 = arith.addf %154, %153 : vector<8x256xf32>
    %156 = arith.mulf %145, %155 : vector<8x256xf32>
    %157 = vector.extract_strided_slice %142 {offsets = [0, 256], sizes = [8, 256], strides = [1, 1]} : vector<8x512xf32> to vector<8x256xf32>
    %158 = arith.mulf %156, %157 : vector<8x256xf32>
    %159 = arith.truncf %158 : vector<8x256xf32> to vector<8x256xbf16>
    %c0_60 = arith.constant 0 : index
    %c0_61 = arith.constant 0 : index
    %160 = vector.load %arg8[%c0_60, %c0_61] : memref<256x128xbf16, #tpu.memory_space<vmem>>, vector<256x128xbf16>
    %cst_62 = arith.constant dense<0.000000e+00> : vector<8x128xf32>
    %161 = tpu.matmul %159, %160, %cst_62 {dimension_numbers = #tpu.dot_dimension_numbers<[1], [0], [0], [1], [0, 0, 1, 1], [], []>} : vector<8x256xbf16>, vector<256x128xbf16>, vector<8x128xf32> -> vector<8x128xf32>
    %c0_63 = arith.constant 0 : index
    %c0_64 = arith.constant 0 : index
    %162 = vector.load %arg9[%c0_63, %c0_64] : memref<1x128xf32, #tpu.memory_space<vmem>>, vector<1x128xf32>
    %163 = vector.broadcast %162 : vector<1x128xf32> to vector<8x128xf32>
    %164 = arith.addf %161, %163 : vector<8x128xf32>
    %165 = arith.addf %94, %164 : vector<8x128xf32>
    %c0_65 = arith.constant 0 : index
    %c0_66 = arith.constant 0 : index
    %c0_67 = arith.constant 0 : index
    %166 = vector.load %arg10[%c0_65, %c0_66, %c0_67] : memref<1x8x128xf32, #tpu.memory_space<vmem>>, vector<1x8x128xf32>
    %167 = vector.shape_cast %166 : vector<1x8x128xf32> to vector<8x128xf32>
    %168 = vector.shape_cast %165 : vector<8x128xf32> to vector<1x8x128xf32>
    tpu.vector_store %arg10[%c0_65, %c0_66, %c0_67], %168 {strides = array<i32>} : memref<1x8x128xf32, #tpu.memory_space<vmem>>, vector<1x8x128xf32>,
    return
  }
  func.func @transform_0(%arg0: i32) -> (i32, i32, i32) {
    %c0_i32 = arith.constant 0 : i32
    %c0_i32_0 = arith.constant 0 : i32
    %c0_i32_1 = arith.constant 0 : i32
    return %arg0, %c0_i32, %c0_i32_0 : i32, i32, i32
  }
  func.func @transform_1(%arg0: i32) -> (i32, i32) {
    %c0_i32 = arith.constant 0 : i32
    %c0_i32_0 = arith.constant 0 : i32
    %c0_i32_1 = arith.constant 0 : i32
    return %c0_i32, %c0_i32_0 : i32, i32
  }
  func.func @transform_2(%arg0: i32) -> (i32, i32) {
    %c0_i32 = arith.constant 0 : i32
    %c0_i32_0 = arith.constant 0 : i32
    %c0_i32_1 = arith.constant 0 : i32
    return %c0_i32, %c0_i32_0 : i32, i32
  }
  func.func @transform_3(%arg0: i32) -> (i32, i32) {
    %c0_i32 = arith.constant 0 : i32
    %c0_i32_0 = arith.constant 0 : i32
    %c0_i32_1 = arith.constant 0 : i32
    return %c0_i32, %c0_i32_0 : i32, i32
  }
  func.func @transform_4(%arg0: i32) -> (i32, i32) {
    %c0_i32 = arith.constant 0 : i32
    %c0_i32_0 = arith.constant 0 : i32
    %c0_i32_1 = arith.constant 0 : i32
    return %c0_i32, %c0_i32_0 : i32, i32
  }
  func.func @transform_5(%arg0: i32) -> (i32, i32) {
    %c0_i32 = arith.constant 0 : i32
    %c0_i32_0 = arith.constant 0 : i32
    %c0_i32_1 = arith.constant 0 : i32
    return %c0_i32, %c0_i32_0 : i32, i32
  }
  func.func @transform_6(%arg0: i32) -> (i32, i32) {
    %c0_i32 = arith.constant 0 : i32
    %c0_i32_0 = arith.constant 0 : i32
    %c0_i32_1 = arith.constant 0 : i32
    return %c0_i32, %c0_i32_0 : i32, i32
  }
  func.func @transform_7(%arg0: i32) -> (i32, i32) {
    %c0_i32 = arith.constant 0 : i32
    %c0_i32_0 = arith.constant 0 : i32
    %c0_i32_1 = arith.constant 0 : i32
    return %c0_i32, %c0_i32_0 : i32, i32
  }
  func.func @transform_8(%arg0: i32) -> (i32, i32) {
    %c0_i32 = arith.constant 0 : i32
    %c0_i32_0 = arith.constant 0 : i32
    %c0_i32_1 = arith.constant 0 : i32
    return %c0_i32, %c0_i32_0 : i32, i32
  }
  func.func @transform_9(%arg0: i32) -> (i32, i32, i32) {
    %c0_i32 = arith.constant 0 : i32
    %c0_i32_0 = arith.constant 0 : i32
    %c0_i32_1 = arith.constant 0 : i32
    return %arg0, %c0_i32, %c0_i32_0 : i32, i32, i32
  }
}

</mosaic_0001>

<bundles_post_ra>
// kernel: attn_projection_forward.2
= control target key start
LH: loop header
LB: loop body
LE: loop exit
PB: predicated region body
PF: predicated region fallthrough
CT: control target
= control target key end

     0   :  { %8 = vsyncpa [#allocation3], 0  ;;  %s882_s0 = inlined_call_operand.hbm [shape: f32[16,64], index: 0, kind: input, shape index: {}]   ;;  %s883_s1 = inlined_call_operand.hbm [shape: bf16[64,512], index: 1, kind: input, shape index: {}]   ;;  %s884_s2 = inlined_call_operand.vmem [shape: f32[1,512], index: 2, kind: input, shape index: {}]   ;;  %s885_s3 = inlined_call_operand.vmem [shape: f32[16,512], index: 3, kind: output, shape index: {}]  }
   0x1   :  { %10 = vsyncpa [#allocation3 + $0x1], 0 }
   0x2   :  { %11 = vsyncpa [#allocation5], 0  ;;  %s761_s12 = smov 0   ;;  %s763_s13 = smov 0  }
   0x3   :  { %s765_s14 = smov 0   ;;  %s767_s15 = smov 0  }
   0x4 LB: > { %s127_s18 = sshll.u32 %s883_s1, 4  ;;  %s783_s19 = sadd.s32 4294967295, %s735_s15   ;;  %s735_s15 = sphi %s767_s15, %s892_s15   ;;  %s731_s14 = sphi %s765_s14, %s891_s14   ;;  %s727_s13 = sphi %s763_s13, %s890_s13   ;;  %s723_s12 = sphi %s761_s12, %s889_s12   ;;  %s128_s18 = int_to_ptr.hbm [resolvable:$true] %s127_s18 }
   0x5   : > { %p483_p0 = scmp.ge.s32.totalorder %s735_s15, 1  ;;  %p38_p1 = scmp.eq.s32.totalorder %s783_s19, 0 }
   0x6   : > { %p116_p2 = scmp.lt.s32.totalorder %s735_s15, 3  ;;  %s737_s21 = smov [#allocation4]  }
   0x7   : > { %s129_s22 = sshll.u32 %s737_s21, 4  ;;  %s738_s23 = smov 256   ;;  %s130_s22 = int_to_ptr.vmem [resolvable:$true] %s129_s22 }
   0x8   : > { %p788_p3 = pnand %p483_p0, %p116_p2  ;;  %s739_s24 = smov 16  }
   0x9   : > { %s797_s25 = sadd.s32 1, %s735_s15   ;;  %s24_s27 = sadd.s32 1, %s731_s14 }
   0xa   : > { %p586_p4 = pneg %p788_p3  ;;  %s21_s26 = ssub.s32 %s735_s15, %s797_s25 }
   0xb   : > { %p22_p6 = scmp.eq.s32.totalorder %s21_s26, 0  ;;  %p31_p7 = scmp.ne.s32.totalorder %s731_s14, %s727_s13 }
   0xc   : > { %p587_p5 = pnand %p586_p4, %p38_p1  ;;  %p32_p8 = scmp.eq.s32.totalorder %s735_s15, 0 }
   0xd   : > { %p37_p9 = scmp.ne.s32.totalorder %s727_s13, %s723_s12  ;;  %p595_p12 = scmp.lt.s32.totalorder %s735_s15, 2 }
   0xe   : > { %589 = dma.hbm_to_vmem [thread:$0]  (!%p587_p5), %s128_s18, 2048, %s130_s22, [#allocation5], %s738_s23, %s738_s23, %s739_s24  }
   0xf   : > { %s807_s28 = scalar_select %p22_p6, %s731_s14, %s24_s27  }
  0x10   : > { %p33_p10 = por %p32_p8, %p31_p7  ;;  %p811_p11 = por %p38_p1, %p37_p9 }
  0x11   : > { %s146_s30 = sand.u32 1, %s731_s14   ;;  %s487_s5 = sshll.u32 %s735_s15, 3 }
  0x12   : > { %s486_s4 = sshll.u32 %s146_s30, 3  ;;  %s154_s8 = scalar_lea.hbm %s882_s0, %s487_s5 }
  0x13   : > { %s150_s9 = scalar_lea.vmem [#allocation2], %s486_s4  ;;  %s156_s11 = sshll.u32 %s154_s8, 4  ;;  %s157_s11 = int_to_ptr.hbm [resolvable:$true] %s156_s11 }
  0x14   : > { %s158_s10 = sshll.u32 %s150_s9, 4  ;;  %p821_p13 = pnand %p595_p12, %p33_p10  ;;  %s159_s10 = int_to_ptr.vmem [resolvable:$true] %s158_s10 }
  0x15   : > { %s147_s16 = scalar_lea.sflag [#allocation3], %s146_s30  ;;  %s667_s17 = sshra.s32 %s157_s11, 4  ;;  %s668_s17 = int_to_ptr.hbm [resolvable:$true] %s667_s17 }
  0x16   : > { %s669_s18 = scalar_lea.hbm %s668_s17, 8  ;;  %p671_p2 = pneg %p821_p13 }
  0x17   : > { %p670_p0 = scmp.ne.s32.totalorder %s668_s17, %s669_s18  ;;  %s674_s22 = scalar_lea.hbm %s882_s0, 16 }
  0x18   : > { %p675_p6 = scmp.lt.s32.totalorder %s668_s17, %s882_s0  ;;  %p676_p7 = scmp.lt.s32.totalorder %s674_s22, %s669_s18 }
  0x19   : > { %p672_p4 = pnand %p671_p2, %p670_p0 }
  0x1a   : > { %p677_p8 = por %p676_p7, %p675_p6 }
  0x1b   : > { %p673_p5 = pneg %p672_p4 }
  0x1d   : > { %p678_p9 = pnand %p677_p8, %p673_p5 }
  0x1f   : > { %681 = shalt.err (!%p678_p9)
}
  0x20   : > { %593 = dma.hbm_to_vmem [thread:$0]  (!%p821_p13), %s157_s11, 128, %s159_s10, %s147_s16  }
  0x21   : > { %167 = sbr.rel (%p788_p3) target bundleno = 449 (0x1c1), region = 32  ;;  %s169_s26 = sand.u32 (!%p788_p3), 1, %s727_s13  }
  0x22   : > { %s489_s27 = sshll.u32 (!%p788_p3), %s169_s26, 3  ;;  %s170_s30 = scalar_lea.sflag (!%p788_p3), [#allocation3], %s169_s26 }
  0x23   : > { %s173_s4 = scalar_lea.vmem (!%p788_p3), [#allocation2], %s489_s27 }
  0x26   : > { %714 = dma.done.wait (%p811_p11), %s170_s30, 128  }
  0x27   : > { %716 = vsyncadd (%p811_p11), %s170_s30, 4294967168 }
  0x28   : > { %718 = dma.done.wait (%p38_p1), [#allocation5], 2048  }
  0x29   : > { %720 = vsyncadd (%p38_p1), [#allocation5], 4294965248  ;;  %vm209_vm0 = vcmask 523264   ;;  %v208_v0 = vld [vmem:[%s173_s4] sm:$0xff]  ;;  %v740_v2 = vmov 64.0   ;;  %p202_p1 = scmp.lt.s32.totalorder %s783_s19, 1 }
  0x2a   : > { %v210_v1 = vsel %vm209_vm0, %v208_v0, 0.0  ;;  %633 = vrcp.f32 %v740_v2  ;;  %v543_v14 = vld [vmem:[#allocation4 + $0x60] sm:$0xf]  ;;  %v578_v15 = vld [vmem:[#allocation4 + $0x6c] sm:$0xf0] }
  0x2b   : > { %211 = vadd.xlane.f32.xlu0 %v210_v1  ;;  %v576_v16 = vld [vmem:[#allocation4 + $0x64] sm:$0xf]  ;;  %v544_v17 = vor.u32 %v578_v15, %v543_v14  ;;  %v545_v18 = vld [vmem:[#allocation4 + $0x70] sm:$0xf0]  ;;  %v551_v19 = vld [vmem:[#allocation4 + $0x68] sm:$0xf] }
  0x2c   : > { %v579_v20 = vld [vmem:[#allocation4 + $0x74] sm:$0xf0]  ;;  %v548_v21 = vor.u32 %v576_v16, %v545_v18  ;;  %v577_v23 = vld [vmem:[#allocation4 + $0x6c] sm:$0xf]  ;;  %v553_v24 = vld [vmem:[#allocation4 + $0x78] sm:$0xf0] }
  0x2d   : > { %v552_v22 = vor.u32 %v579_v20, %v551_v19  ;;  %353 = vmatpush.bf16.msra.mxu0 %v544_v17  ;;  %v556_v25 = vor.u32 %v577_v23, %v553_v24  ;;  %v527_v26 = vld [vmem:[#allocation4 + $0x40] sm:$0xf]  ;;  %v574_v27 = vld [vmem:[#allocation4 + $0x4c] sm:$0xf0]  ;;  %v572_v28 = vld [vmem:[#allocation4 + $0x44] sm:$0xf] }
  0x2e   : > { %366 = vmatpush.bf16.msra.mxu1 %v548_v21  ;;  %v528_v29 = vor.u32 %v574_v27, %v527_v26  ;;  %v529_v30 = vld [vmem:[#allocation4 + $0x50] sm:$0xf0]  ;;  %v535_v31 = vld [vmem:[#allocation4 + $0x48] sm:$0xf]  ;;  %v575_v32 = vld [vmem:[#allocation4 + $0x54] sm:$0xf0] }
  0x2f   : > { %379 = vmatpush.bf16.msra.mxu2 %v552_v22  ;;  %392 = vmatpush.bf16.msra.mxu3 %v556_v25  ;;  %v532_v33 = vor.u32 %v572_v28, %v529_v30  ;;  %v536_v34 = vor.u32 %v575_v32, %v535_v31  ;;  %v573_v35 = vld [vmem:[#allocation4 + $0x4c] sm:$0xf]  ;;  %v537_v36 = vld [vmem:[#allocation4 + $0x58] sm:$0xf0]  ;;  %v511_v38 = vld [vmem:[#allocation4 + $0x20] sm:$0xf] }
  0x30   : > { %v634_v3 = vpop.eup %633  ;;  %v540_v37 = vor.u32 %v573_v35, %v537_v36  ;;  %v570_v39 = vld [vmem:[#allocation4 + $0x2c] sm:$0xf0]  ;;  %v568_v40 = vld [vmem:[#allocation4 + $0x24] sm:$0xf]  ;;  %v513_v42 = vld [vmem:[#allocation4 + $0x30] sm:$0xf0] }
  0x31   : > { %v214_v4 = vmul.f32 64.0, %v634_v3  ;;  %vm218_vm1 = vweird.f32 %v634_v3  ;;  %354 = vmatpush.bf16.msra.mxu0 %v528_v29  ;;  %v512_v41 = vor.u32 %v570_v39, %v511_v38  ;;  %v519_v43 = vld [vmem:[#allocation4 + $0x28] sm:$0xf]  ;;  %v571_v44 = vld [vmem:[#allocation4 + $0x34] sm:$0xf0]  ;;  %v516_v45 = vor.u32 %v568_v40, %v513_v42  ;;  %s894_s19 = smov (!%p202_p1, %s783_s19), 1 }
  0x32   : > { %367 = vmatpush.bf16.msra.mxu1 %v532_v33  ;;  %v520_v46 = vor.u32 %v571_v44, %v519_v43  ;;  %v569_v47 = vld [vmem:[#allocation4 + $0x2c] sm:$0xf]  ;;  %v521_v48 = vld [vmem:[#allocation4 + $0x38] sm:$0xf0]  ;;  %v495_v50 = vld [vmem:[#allocation4] sm:$0xf] }
  0x33   : > { %v215_v5 = vsub.f32 1.0, %v214_v4  ;;  %380 = vmatpush.bf16.msra.mxu2 %v536_v34  ;;  %393 = vmatpush.bf16.msra.mxu3 %v540_v37  ;;  %v524_v49 = vor.u32 %v569_v47, %v521_v48  ;;  %v566_v51 = vld [vmem:[#allocation4 + $0xc] sm:$0xf0]  ;;  %v564_v52 = vld [vmem:[#allocation4 + $0x4] sm:$0xf]  ;;  %s563_s5 = sshll.u32 %s894_s19, 5 }
  0x34   : > { %v496_v53 = vor.u32 %v566_v51, %v495_v50  ;;  %v497_v54 = vld [vmem:[#allocation4 + $0x10] sm:$0xf0]  ;;  %v503_v55 = vld [vmem:[#allocation4 + $0x8] sm:$0xf]  ;;  %v567_v56 = vld [vmem:[#allocation4 + $0x14] sm:$0xf0]  ;;  %s206_s8 = scalar_lea.vmem %s885_s3, %s563_s5 }
  0x35   : > { %v216_v6 = vmul.f32 %v634_v3, %v215_v5  ;;  %355 = vmatpush.bf16.msra.mxu0 %v512_v41  ;;  %v500_v57 = vor.u32 %v564_v52, %v497_v54  ;;  %v504_v58 = vor.u32 %v567_v56, %v503_v55  ;;  %v565_v59 = vld [vmem:[#allocation4 + $0xc] sm:$0xf]  ;;  %v505_v60 = vld [vmem:[#allocation4 + $0x18] sm:$0xf0] }
  0x36   : > { %368 = vmatpush.bf16.msra.mxu1 %v516_v45  ;;  %v508_v61 = vor.u32 %v565_v59, %v505_v60 }
  0x37   : > { %v217_v7 = vadd.f32 %v634_v3, %v216_v6  ;;  %381 = vmatpush.bf16.msra.mxu2 %v520_v46  ;;  %394 = vmatpush.bf16.msra.mxu3 %v524_v49 }
  0x39   : > { %v847_v8 = vsel %vm218_vm1, %v634_v3, %v217_v7  ;;  %356 = vmatpush.bf16.msra.mxu0 %v496_v53 }
  0x3a   : > { %369 = vmatpush.bf16.msra.mxu1 %v500_v57 }
  0x3b   : > { %382 = vmatpush.bf16.msra.mxu2 %v504_v58  ;;  %395 = vmatpush.bf16.msra.mxu3 %v508_v61 }
  0x9e   : > { %v212_v9 = vpop.xlane.xlu0 %211 }
  0x9f   : > { %v220_v10 = vmul.f32 %v847_v8, %v212_v9 }
  0xa1   : > { %v850_v11 = vsub.f32 %v208_v0, %v220_v10 }
  0xa3   : > { %v222_v12 = vmul.f32 %v850_v11, %v850_v11 }
  0xa5   : > { %v223_v13 = vsel %vm209_vm0, %v222_v12, 0.0 }
  0xa6   : > { %224 = vadd.xlane.f32.xlu0 %v223_v13 }
 0x119   : > { %v225_v62 = vpop.xlane.xlu0 %224 }
 0x11a   : > { %v226_v63 = vmul.f32 %v225_v62, %v847_v8  ;;  %v256_v8 = vld [vmem:[%s884_s2] sm:$0xf] }
 0x11b   : > { %v258_v12 = vperm.slane %v256_v8, 0  ;;  %v259_v13 = vperm.slane %v256_v8, 1  ;;  %v260_v17 = vperm.slane %v256_v8, 2  ;;  %v261_v18 = vperm.slane %v256_v8, 3 }
 0x11c   : > { %v227_v0 = vadd.f32 1e-05, %v226_v63 }
 0x11e   : > { %635 = vrsqrt.f32 %v227_v0  ;;  %vm234_vm3 = vweird.f32 %v227_v0 }
 0x124   : > { %v636_v1 = vpop.eup %635 }
 0x125   : > { %v229_v2 = vmul.f32 %v636_v1, %v227_v0  ;;  %vm235_vm2 = vweird.f32 %v636_v1 }
 0x126   : > { %vm236_vm4 = vmor %vm234_vm3, %vm235_vm2 }
 0x127   : > { %v230_v3 = vmul.f32 %v636_v1, %v229_v2 }
 0x129   : > { %v231_v4 = vmul.f32 0.5, %v230_v3 }
 0x12b   : > { %v232_v5 = vsub.f32 1.5, %v231_v4 }
 0x12d   : > { %v233_v6 = vmul.f32 %v636_v1, %v232_v5 }
 0x12f   : > { %v237_v7 = vsel %vm236_vm4, %v636_v1, %v233_v6 }
 0x130   : > { %v238_v9 = vmul.f32 %v237_v7, %v850_v11 }
 0x132   : > { %v239_v10 = vpack.c.bf16 %v238_v9, %v238_v9 }
 0x134   : > { %557 = vmatmul.msk.bf16.vlgmr.msra.gmra.mxu0 %vm209_vm0, %v239_v10  ;;  %558 = vmatmul.msk.bf16.vlgmr.msra.gmra.mxu1 %vm209_vm0, %v239_v10 }
 0x135   : > { %559 = vmatmul.msk.bf16.vlgmr.msra.gmra.mxu2 %vm209_vm0, %v239_v10  ;;  %560 = vmatmul.msk.bf16.vlgmr.msra.gmra.mxu3 %vm209_vm0, %v239_v10 }
 0x1b1   : > { %v358_v11 = vpop.f32.mrf.mxu0  ;;  %v371_v14 = vpop.f32.mrf.mxu1 }
 0x1b2   : > { %v359_v15 = vadd.f32 %v358_v11, %v258_v12  ;;  %v372_v16 = vadd.f32 %v371_v14, %v259_v13 }
 0x1b4   : > { %401 = vst [vmem:[%s206_s8] sm:$0xff] %v359_v15 }
 0x1b5   : > { %402 = vst [vmem:[%s206_s8 + $0x8] sm:$0xff] %v372_v16 }
 0x1b8   : > { %v384_v19 = vpop.f32.mrf.mxu2  ;;  %v397_v20 = vpop.f32.mrf.mxu3 }
 0x1b9   : > { %v385_v21 = vadd.f32 %v384_v19, %v260_v17  ;;  %v398_v22 = vadd.f32 %v397_v20, %v261_v18  ;;  %v360_v23 = vpop.f32.mrf.mxu0  ;;  %v373_v24 = vpop.f32.mrf.mxu1 }
 0x1bb   : > { %403 = vst [vmem:[%s206_s8 + $0x10] sm:$0xff] %v385_v21 }
 0x1bc   : > { %404 = vst [vmem:[%s206_s8 + $0x18] sm:$0xff] %v398_v22 }
 0x1c0   : > { %v386_v25 = vpop.f32.mrf.mxu2  ;;  %v399_v26 = vpop.f32.mrf.mxu3 }
 0x1c1 PF: > { %p14_p3 = scmp.ge.s32.totalorder %s797_s25, 4   ;;  %s889_s12 = smov %s727_s13 }
 0x1c2   : > { %s890_s13 = smov %s731_s14  ;;  %s891_s14 = smov %s807_s28 }
 0x1c3   : > { %s892_s15 = smov %s797_s25  ;;  %16 = sbr.rel (!%p14_p3) target bundleno = 4 (0x4), region = 76 }
 0x1c8   :  { %426 = vsyncpa [#allocation3], 1 }
 0x1c9   :  { %428 = vsyncpa [#allocation3 + $0x1], 1 }
 0x1ca   :  { %429 = vsyncpa [#allocation5], 1 }

// kernel: attn_projection_forward.3
= control target key start
LH: loop header
LB: loop body
LE: loop exit
PB: predicated region body
PF: predicated region fallthrough
CT: control target
= control target key end

     0   :  { %s2347_s0 = inlined_call_operand.vmem [shape: f32[2,8,512], index: 0, kind: input, shape index: {}]   ;;  %s2348_s1 = inlined_call_operand.hbm [shape: bf16[128,128], index: 1, kind: input, shape index: {}]   ;;  %s2349_s2 = inlined_call_operand.vmem [shape: f32[1,128], index: 2, kind: input, shape index: {}]   ;;  %s2350_s3 = inlined_call_operand.vmem [shape: f32[1,128], index: 3, kind: input, shape index: {}]   ;;  %s2351_s4 = inlined_call_operand.vmem [shape: f32[1,128], index: 4, kind: input, shape index: {}]   ;;  %s2352_s5 = inlined_call_operand.hbm [shape: bf16[128,512], index: 5, kind: input, shape index: {}]   ;;  %s2353_s6 = inlined_call_operand.hbm [shape: f32[1,512], index: 6, kind: input, shape index: {}]   ;;  %s2354_s7 = inlined_call_operand.hbm [shape: bf16[256,128], index: 7, kind: input, shape index: {}]   ;;  %s2355_s8 = inlined_call_operand.vmem [shape: f32[1,128], index: 8, kind: input, shape index: {}]   ;;  %s2356_s9 = inlined_call_operand.hbm [shape: f32[2,8,128], index: 9, kind: output, shape index: {}]  }
   0x1   :  { %2361 = sst [smem:[#allocation20_spill]] %s2348_s1 }
   0x2   :  { %2362 = sst [smem:[#allocation21_spill]] %s2352_s5 }
   0x3   :  { %14 = vsyncpa [#allocation4], 0 }
   0x4   :  { %15 = vsyncpa [#allocation7], 0 }
   0x5   :  { %16 = vsyncpa [#allocation10], 0 }
   0x6   :  { %17 = vsyncpa [#allocation5], 0 }
   0x7   :  { %19 = vsyncpa [#allocation5 + $0x1], 0  ;;  %s2124_s30 = smov 0   ;;  %s2126_s10 = smov 0  }
   0x8   :  { %s2128_s11 = smov 0   ;;  %s2130_s12 = smov 0  }
   0x9 LB: > { %2363 = sst [smem:[#allocation16_spill]] %s2056_s11  ;;  %s2145_s13 = sadd.s32 4294967295, %s2060_s12   ;;  %s2060_s12 = sphi %s2130_s12, %s2374_s12   ;;  %s2056_s11 = sphi %s2128_s11, %s2376_s11   ;;  %s2052_s10 = sphi %s2126_s10, %s2378_s10   ;;  %s2048_s30 = sphi %s2124_s30, %s2377_s30  }
   0xa   : > { %s1436_s14 = sadd.s32 4294967294, %s2060_s12   ;;  %s2149_s15 = sadd.s32 1, %s2060_s12  }
   0xb   : > { %2364 = sst [smem:[#allocation17_spill]] %s2149_s15  ;;  %s226_s16 = sadd.s32 1, %s2056_s11 }
   0xc   : > { %s223_s17 = ssub.s32 %s2060_s12, %s2149_s15  ;;  %p236_p0 = scmp.ne.s32.totalorder %s2056_s11, %s2052_s10 }
   0xd   : > { %p224_p1 = scmp.eq.s32.totalorder %s223_s17, 0  ;;  %p237_p2 = scmp.eq.s32.totalorder %s2145_s13, 1 }
   0xe   : > { %p242_p3 = scmp.ne.s32.totalorder %s2052_s10, %s2048_s30  ;;  %p243_p4 = scmp.eq.s32.totalorder %s1436_s14, 1 }
   0xf   : > { %s2160_s18 = scalar_select %p224_p1, %s2056_s11, %s226_s16  }
  0x10   : > { %p2162_p5 = por %p237_p2, %p236_p0  ;;  %p2166_p6 = por %p243_p4, %p242_p3 }
  0x11   : > { %2365 = sst [smem:[#allocation18_spill]] %s2160_s18  ;;  %p1437_p7 = scmp.ge.s32.totalorder %s2060_s12, 1 }
  0x12   : > { %s2367_s20 = scalar_select %p2166_p6, 1, 0 }
  0x13   : > { %p250_p8 = scmp.lt.s32.totalorder %s2060_s12, 3  ;;  %p1783_p9 = scmp.eq.s32.totalorder %s2145_s13, 0 }
  0x14   : > { %2368 = sst [smem:[#allocation19_spill]] %s2367_s20  ;;  %s2062_s25 = smov [#allocation6]  }
  0x15   : > { %p2173_p10 = pnand %p1437_p7, %p250_p8  ;;  %s2370_s5 = sld [smem:[#allocation21_spill]] }
  0x16   : > { %s286_s26 = sshll.u32 %s2062_s25, 4  ;;  %s2372_s1 = sld [smem:[#allocation20_spill]]  ;;  %s287_s26 = int_to_ptr.vmem [resolvable:$true] %s286_s26 }
  0x17   : > { %p1766_p11 = pneg %p2173_p10  ;;  %s2063_s16 = smov 256  }
  0x18   : > { %s2064_s17 = smov 16   ;;  %s2065_s22 = smov [#allocation3]  }
  0x19   : > { %p2184_p12 = pnand %p1783_p9, %p1766_p11  ;;  %s263_s23 = sshll.u32 %s2065_s22, 4  ;;  %s264_s23 = int_to_ptr.vmem [resolvable:$true] %s263_s23 }
  0x1a   : > { %s2066_s25 = smov 64   ;;  %s299_s28 = sshll.u32 %s2353_s6, 4  ;;  %s300_s28 = int_to_ptr.hbm [resolvable:$true] %s299_s28 }
  0x1b   : > { %s284_s24 = sshll.u32 %s2370_s5, 4  ;;  %s2067_s5 = smov 4   ;;  %s285_s24 = int_to_ptr.hbm [resolvable:$true] %s284_s24 }
  0x1c   : > { %s261_s14 = sshll.u32 %s2372_s1, 4  ;;  %s2068_s29 = smov [#allocation8]   ;;  %s262_s14 = int_to_ptr.hbm [resolvable:$true] %s261_s14 }
  0x1d   : > { %1772 = dma.hbm_to_vmem [thread:$0]  (!%p2184_p12), %s285_s24, 4096, %s287_s26, [#allocation7], %s2063_s16, %s2063_s16, %s2064_s17  }
  0x1e   : > { %1769 = dma.hbm_to_vmem [thread:$0]  (!%p2184_p12), %s262_s14, 1024, %s264_s23, [#allocation4], %s2066_s25, %s2066_s25, %s2067_s5  }
  0x1f   : > { %s301_s1 = sshll.u32 %s2068_s29, 4  ;;  %s310_s24 = sshll.u32 %s2354_s7, 4  ;;  %s302_s1 = int_to_ptr.vmem [resolvable:$true] %s301_s1  ;;  %s311_s24 = int_to_ptr.hbm [resolvable:$true] %s310_s24 }
  0x20   : > { %1775 = dma.hbm_to_vmem [thread:$0]  (!%p2184_p12), %s300_s28, 64, %s302_s1, [#allocation7]  }
  0x21   : > { %s2069_s26 = smov [#allocation9]   ;;  %339 = sbr.rel (%p2173_p10) target bundleno = 2198 (0x896), region = 56 }
  0x22   : > { %s312_s16 = sshll.u32 %s2069_s26, 4  ;;  %s313_s16 = int_to_ptr.vmem [resolvable:$true] %s312_s16 }
  0x23   : > { %1778 = dma.hbm_to_vmem [thread:$0]  (!%p2184_p12), %s311_s24, 2048, %s313_s16, [#allocation10], %s2066_s25, %s2066_s25, %s2067_s5  }
  0x26   : > { %2031 = dma.done.wait (%p1783_p9), [#allocation4], 1024  }
  0x27   : > { %2033 = vsyncadd (%p1783_p9), [#allocation4], 4294966272 }
  0x28   : > { %2035 = dma.done.wait (%p1783_p9), [#allocation7], 4160  }
  0x29   : > { %2037 = vsyncadd (%p1783_p9), [#allocation7], 4294963136 }
  0x2a   : > { %2039 = dma.done.wait (%p1783_p9), [#allocation10], 2048  }
  0x2b   : > { %2041 = vsyncadd (%p1783_p9), [#allocation10], 4294965248  ;;  %p391_p13 = scmp.lt.s32.totalorder %s2145_s13, 1  ;;  %vm405_vm0 = vcmask 261120   ;;  %s2070_s20 = smov 96   ;;  %v400_v5 = vlaneseq  ;;  %vm434_vm2 = vcmask 64512  }
  0x2c   : > { %s2071_s21 = smov 64   ;;  %s2072_s27 = smov 32   ;;  %vm568_vm11 = vcmask 523520  }
  0x2d   : > { %s392_s1 = scalar_select %p391_p13, %s2145_s13, 1  ;;  %v2234_v6 = vshrl.u32 %v400_v5, 7  ;;  %v2236_v7 = vand.u32 127, %v400_v5 }
  0x2e   : > { %s388_s29 = sand.u32 1, %s2052_s10   ;;  %s1688_s26 = sshll.u32 %s2145_s13, 3 }
  0x2f   : > { %s1691_s5 = sshll.u32 %s392_s1, 5  ;;  %vm404_vm1 = vcmp.le.s32.totalorder %v2236_v7, %v2234_v6  ;;  %s1448_s24 = sshll.u32 %s388_s29, 3 }
  0x30   : > { %s2224_s18 = scalar_lea.vmem %s2347_s0, %s1691_s5  ;;  %s1331_s15 = scalar_lea.hbm %s2356_s9, %s1688_s26 }
  0x31   : > { %v398_v0 = vld [vmem:[%s2224_s18 + $0x10] sm:$0xff]  ;;  %v397_v1 = vld [vmem:[%s2224_s18 + $0x8] sm:$0xff]  ;;  %v2246_v15 = vld [vmem:[%s2224_s18 + $0x18] sm:$0xff]  ;;  %s1321_s13 = scalar_lea.sflag [#allocation5], %s388_s29  ;;  %s2006_s23 = scalar_lea.hbm %s2356_s9, 16 }
  0x32   : > { %485 = vrot.lane.b32.xlu0 %v398_v0, %s2070_s20  ;;  %1451 = vmatpush.xpose.msk.msra.mxu2 %vm405_vm0, %v398_v0 }
  0x33   : > { %538 = vrot.lane.b32.xlu2 %v2246_v15, %s2070_s20  ;;  %477 = vmatpush.msra.mxu1 %v2246_v15 }
  0x35   : > { %1452 = vmatmul.msk.f32.vlgmr.msra.gmra.mxu2 %vm405_vm0, %v397_v1 }
  0x3a   : > { %483 = vrot.lane.b32.xlu0 %v397_v1, %s2070_s20 }
  0x3b   : > { %572 = vrot.lane.b32.xlu2 %v398_v0, %s2071_s21 }
  0x42   : > { %570 = vrot.lane.b32.xlu0 %v397_v1, %s2071_s21 }
  0x43   : > { %656 = vrot.lane.b32.xlu2 %v397_v1, %s2072_s27 }
  0x8d   : > { %v539_v21 = vpop.permute.xlu2 %538 }
  0x95   : > { %v573_v22 = vpop.permute.xlu2 %572 }
  0x9d   : > { %v657_v36 = vpop.permute.xlu2 %656 }
  0xa4   : > { %v486_v2 = vpop.permute.xlu0 %485 }
  0xa5   : > { %1454 = vmatpush.xpose.msk.msrb.mxu2 %vm405_vm0, %v486_v2 }
  0xa9   : > { %559 = vmatpush.msra.mxu2 %v539_v21 }
  0xac   : > { %v484_v3 = vpop.permute.xlu0 %483 }
  0xad   : > { %1455 = vmatmul.msk.f32.vlgmr.msrb.gmra.mxu2 %vm405_vm0, %v484_v3 }
  0xae   : > { %1457 = vmatpush.xpose.msk.msrb.mxu2 %vm405_vm0, %v573_v22 }
  0xb4   : > { %v571_v37 = vpop.permute.xlu0 %570 }
  0xb8   : > { %v429_v4 = vpop.f32.mrf.mxu2 }
  0xb9   : > { %v432_v18 = vmul.f32 0.17677669, %v429_v4 }
  0xbb   : > { %v433_v19 = vsel %vm404_vm1, %v432_v18, -1e+30 }
  0xbc   : > { %v435_v20 = vsel %vm434_vm2, %v433_v19, -inf }
 0x130   : > { %v508_v8 = vpop.f32.mrf.mxu2 }
 0x131   : > { %v511_v9 = vmul.f32 0.17677669, %v508_v8 }
 0x133   : > { %v512_v10 = vsel %vm404_vm1, %v511_v9, -1e+30 }
 0x134   : > { %v513_v11 = vsel %vm434_vm2, %v512_v10, -inf }
 0x135   : > { %514 = vmax.xlane.f32.xlu1 %v513_v11 }
 0x1a8   : > { %v515_v12 = vpop.xlane.xlu1 %514 }
 0x1a9   : > { %v516_v13 = vsub.f32 %v512_v10, %v515_v12 }
 0x1ab   : > { %v517_v14 = vmul.f32 1.442695, %v516_v13 }
 0x1ad   : > { %1840 = vpow2.f32 %v517_v14 }
 0x1b3   : > { %v1841_v16 = vpop.eup %1840 }
 0x1b4   : > { %v519_v17 = vsel %vm434_vm2, %v1841_v16, 0.0 }
 0x1b5   : > { %520 = vadd.xlane.f32.xlu1 %v519_v17 }
 0x1ce   : > { %658 = vrot.lane.b32.xlu1 %v398_v0, %s2072_s27 }
 0x1f8   : > { %436 = vmax.xlane.f32.xlu1 %v435_v20 }
 0x228   : > { %v521_v23 = vpop.xlane.xlu1 %520 }
 0x229   : > { %1842 = vrcp.f32 %v521_v23  ;;  %v533_v27 = vand.u32 2147483648, %v521_v23  ;;  %v531_v29 = vand.u32 2147483647, %v521_v23  ;;  %vm527_vm4 = vweird.f32 %v521_v23 }
 0x22b   : > { %v534_v31 = vor.u32 1.1754944e-38, %v533_v27  ;;  %vm532_vm6 = vcmp.eq.f32.partialorder %v531_v29, 8.507059e+37 }
 0x22f   : > { %v1843_v24 = vpop.eup %1842 }
 0x230   : > { %v523_v25 = vmul.f32 %v1843_v24, %v521_v23  ;;  %vm528_vm3 = vweird.f32 %v1843_v24 }
 0x231   : > { %vm529_vm5 = vmor %vm527_vm4, %vm528_vm3 }
 0x232   : > { %v524_v26 = vsub.f32 1.0, %v523_v25 }
 0x234   : > { %v525_v28 = vmul.f32 %v1843_v24, %v524_v26 }
 0x236   : > { %v526_v30 = vadd.f32 %v1843_v24, %v525_v28 }
 0x238   : > { %v530_v32 = vsel %vm529_vm5, %v1843_v24, %v526_v30  ;;  %vm740_vm5 = vcmask 1048320  }
 0x239   : > { %v535_v33 = vsel %vm532_vm6, %v534_v31, %v530_v32 }
 0x23a   : > { %v536_v34 = vmul.f32 %v1841_v16, %v535_v33 }
 0x23c   : > { %1456 = vmatmul.msk.f32.vlgmr.msra.gmra.mxu2 %vm434_vm2, %v536_v34 }
 0x240   : > { %v659_v35 = vpop.permute.xlu1 %658 }
 0x241   : > { %1460 = vmatpush.xpose.msk.msra.mxu0 %vm405_vm0, %v659_v35 }
 0x244   : > { %1458 = vmatmul.msk.f32.vlgmr.msrb.gmra.mxu2 %vm405_vm0, %v571_v37  ;;  %1461 = vmatmul.msk.f32.vlgmr.msra.gmra.mxu0 %vm405_vm0, %v657_v36 }
 0x26b   : > { %v437_v38 = vpop.xlane.xlu1 %436 }
 0x26c   : > { %v438_v39 = vsub.f32 %v433_v19, %v437_v38 }
 0x26e   : > { %v439_v40 = vmul.f32 1.442695, %v438_v39 }
 0x270   : > { %1844 = vpow2.f32 %v439_v40  ;;  %v1699_v40 = vld [vmem:[#allocation3 + $0x38] sm:$0xff] }
 0x271   : > { %812 = vmatpush.bf16.msrb.mxu1 %v1699_v40  ;;  %v1725_v40 = vld [vmem:[#allocation6 + $0xcc] sm:$0xf] }
 0x276   : > { %v1845_v41 = vpop.eup %1844 }
 0x277   : > { %v441_v42 = vsel %vm434_vm2, %v1845_v41, 0.0 }
 0x278   : > { %442 = vadd.xlane.f32.xlu1 %v441_v42  ;;  %v1697_v42 = vld [vmem:[#allocation3 + $0x28] sm:$0xff] }
 0x2bf   : > { %v561_v43 = vpop.f32.mrf.mxu2 }
 0x2c0   : > { %565 = vrot.lane.b32.xlu1 %v561_v43, %s2072_s27  ;;  %v1696_v43 = vld [vmem:[#allocation3 + $0x20] sm:$0xff] }
 0x2c1   : > { %v681_v44 = vpop.f32.mrf.mxu0 }
 0x2c2   : > { %v684_v45 = vmul.f32 0.17677669, %v681_v44  ;;  %v1695_v44 = vld [vmem:[#allocation3 + $0x18] sm:$0xff] }
 0x2c4   : > { %v685_v46 = vsel %vm404_vm1, %v684_v45, -1e+30  ;;  %v1694_v45 = vld [vmem:[#allocation3 + $0x10] sm:$0xff] }
 0x2c5   : > { %v686_v47 = vsel %vm434_vm2, %v685_v46, -inf }
 0x2c6   : > { %687 = vmax.xlane.f32.xlu2 %v686_v47  ;;  %v1692_v47 = vld [vmem:[#allocation3] sm:$0xff] }
 0x2c7   : > { %v595_v48 = vpop.f32.mrf.mxu2 }
 0x2c8   : > { %v598_v49 = vmul.f32 0.17677669, %v595_v48 }
 0x2ca   : > { %v599_v50 = vsel %vm404_vm1, %v598_v49, -1e+30 }
 0x2cb   : > { %v600_v51 = vsel %vm434_vm2, %v599_v50, -inf }
 0x2cc   : > { %601 = vmax.xlane.f32.xlu0 %v600_v51 }
 0x2eb   : > { %v443_v52 = vpop.xlane.xlu1 %442 }
 0x2ec   : > { %1846 = vrcp.f32 %v443_v52  ;;  %v455_v56 = vand.u32 2147483648, %v443_v52  ;;  %v453_v58 = vand.u32 2147483647, %v443_v52  ;;  %vm449_vm8 = vweird.f32 %v443_v52 }
 0x2ee   : > { %v456_v60 = vor.u32 1.1754944e-38, %v455_v56  ;;  %vm454_vm10 = vcmp.eq.f32.partialorder %v453_v58, 8.507059e+37  ;;  %v2073_v58 = vmov 128.0  }
 0x2f2   : > { %v1847_v53 = vpop.eup %1846 }
 0x2f3   : > { %v445_v54 = vmul.f32 %v1847_v53, %v443_v52  ;;  %vm450_vm7 = vweird.f32 %v1847_v53  ;;  %v1836_v52 = vld [vmem:[%s2349_s2] ss:$0 sm:$0xff] }
 0x2f4   : > { %vm451_vm9 = vmor %vm449_vm8, %vm450_vm7 }
 0x2f5   : > { %v446_v55 = vsub.f32 1.0, %v445_v54 }
 0x2f7   : > { %v447_v57 = vmul.f32 %v1847_v53, %v446_v55 }
 0x2f9   : > { %v448_v59 = vadd.f32 %v1847_v53, %v447_v57 }
 0x2fb   : > { %v452_v61 = vsel %vm451_vm9, %v1847_v53, %v448_v59  ;;  %v396_v53 = vld [vmem:[%s2224_s18] sm:$0xff]  ;;  %s390_s18 = scalar_lea.vmem [#allocation11], %s1448_s24 }
 0x2fc   : > { %v457_v62 = vsel %vm454_vm10, %v456_v60, %v452_v61 }
 0x2fd   : > { %v458_v63 = vmul.f32 %v1845_v41, %v457_v62  ;;  %v1698_v41 = vld [vmem:[#allocation3 + $0x30] sm:$0xff] }
 0x2fe   : > { %813 = vmatpush.bf16.msrb.mxu1 %v1698_v41 }
 0x2ff   : > { %1453 = vmatmul.msk.f32.vlgmr.msra.gmra.mxu1 %vm434_vm2, %v458_v63 }
 0x302   : > { %814 = vmatpush.bf16.msrb.mxu1 %v1697_v42  ;;  %v1603_v42 = vld [vmem:[#allocation6 + $0xd8] sm:$0xf0] }
 0x306   : > { %815 = vmatpush.bf16.msrb.mxu1 %v1696_v43  ;;  %v1606_v43 = vor.u32 %v1725_v40, %v1603_v42  ;;  %v1707_v40 = vld [vmem:[#allocation6 + $0x34] sm:$0xf0] }
 0x30a   : > { %816 = vmatpush.bf16.msrb.mxu1 %v1695_v44 }
 0x30e   : > { %817 = vmatpush.bf16.msrb.mxu1 %v1694_v45 }
 0x332   : > { %v566_v11 = vpop.permute.xlu1 %565 }
 0x339   : > { %v688_v0 = vpop.xlane.xlu2 %687 }
 0x33a   : > { %v689_v1 = vsub.f32 %v685_v46, %v688_v0  ;;  %v1693_v46 = vld [vmem:[#allocation3 + $0x8] sm:$0xff] }
 0x33b   : > { %818 = vmatpush.bf16.msrb.mxu1 %v1693_v46 }
 0x33c   : > { %v690_v2 = vmul.f32 1.442695, %v689_v1 }
 0x33e   : > { %1848 = vpow2.f32 %v690_v2 }
 0x33f   : > { %v602_v3 = vpop.xlane.xlu0 %601  ;;  %819 = vmatpush.bf16.msrb.mxu1 %v1692_v47 }
 0x340   : > { %v603_v4 = vsub.f32 %v599_v50, %v602_v3 }
 0x342   : > { %v604_v5 = vmul.f32 1.442695, %v603_v4 }
 0x344   : > { %v1849_v6 = vpop.eup %1848  ;;  %1850 = vpow2.f32 %v604_v5 }
 0x345   : > { %v692_v7 = vsel %vm434_vm2, %v1849_v6, 0.0 }
 0x346   : > { %693 = vadd.xlane.f32.xlu0 %v692_v7 }
 0x34a   : > { %v1851_v8 = vpop.eup %1850 }
 0x34b   : > { %v606_v9 = vsel %vm434_vm2, %v1851_v8, 0.0 }
 0x34c   : > { %607 = vadd.xlane.f32.xlu2 %v606_v9 }
 0x35a   : > { %710 = vrot.lane.b32.xlu0 %v2246_v15, %s2072_s27 }
 0x364   : > { %624 = vrot.lane.b32.xlu2 %v2246_v15, %s2071_s21 }
 0x37c   : > { %v479_v10 = vpop.f32.mrf.mxu1 }
 0x37d   : > { %482 = vst.msk [vmem:[#allocation2] sm:$0xff] %vm405_vm0, %v479_v10 }
 0x37e   : > { %569 = vst.msk [vmem:[#allocation2] sm:$0xff] %vm568_vm11, %v566_v11 }
 0x3b9   : > { %v694_v12 = vpop.xlane.xlu0 %693 }
 0x3ba   : > { %1852 = vrcp.f32 %v694_v12  ;;  %v706_v18 = vand.u32 2147483648, %v694_v12  ;;  %v704_v20 = vand.u32 2147483647, %v694_v12  ;;  %vm700_vm13 = vweird.f32 %v694_v12 }
 0x3bc   : > { %v707_v24 = vor.u32 1.1754944e-38, %v706_v18  ;;  %vm705_vm15 = vcmp.eq.f32.partialorder %v704_v20, 8.507059e+37  ;;  %v1838_v18 = vld [vmem:[%s2351_s4] ss:$0 sm:$0xff] }
 0x3bf   : > { %v608_v13 = vpop.xlane.xlu2 %607 }
 0x3c0   : > { %v1853_v14 = vpop.eup %1852  ;;  %1854 = vrcp.f32 %v608_v13  ;;  %v620_v28 = vand.u32 2147483648, %v608_v13  ;;  %v618_v31 = vand.u32 2147483647, %v608_v13  ;;  %vm614_vm1 = vweird.f32 %v608_v13 }
 0x3c1   : > { %v696_v16 = vmul.f32 %v1853_v14, %v694_v12  ;;  %vm701_vm12 = vweird.f32 %v1853_v14  ;;  %1856 = vrcp.f32 %v2073_v58  ;;  %v1721_v58 = vld [vmem:[#allocation6 + $0xac] sm:$0xf] }
 0x3c2   : > { %vm702_vm14 = vmor %vm700_vm13, %vm701_vm12  ;;  %v621_v34 = vor.u32 1.1754944e-38, %v620_v28  ;;  %vm619_vm4 = vcmp.eq.f32.partialorder %v618_v31, 8.507059e+37  ;;  %v1593_v31 = vld [vmem:[#allocation6 + $0xc0] sm:$0xf] }
 0x3c3   : > { %v697_v17 = vsub.f32 1.0, %v696_v16 }
 0x3c5   : > { %v698_v19 = vmul.f32 %v1853_v14, %v697_v17 }
 0x3c6   : > { %v1855_v21 = vpop.eup %1854 }
 0x3c7   : > { %v699_v22 = vadd.f32 %v1853_v14, %v698_v19  ;;  %v610_v15 = vmul.f32 %v1855_v21, %v608_v13  ;;  %v625_v23 = vpop.permute.xlu2 %624  ;;  %vm615_vm0 = vweird.f32 %v1855_v21  ;;  %v1857_v59 = vpop.eup %1856 }
 0x3c8   : > { %645 = vmatpush.msra.mxu3 %v625_v23  ;;  %vm616_vm3 = vmor %vm614_vm1, %vm615_vm0  ;;  %v829_v60 = vmul.f32 128.0, %v1857_v59  ;;  %vm833_vm6 = vweird.f32 %v1857_v59 }
 0x3c9   : > { %v703_v25 = vsel %vm702_vm14, %v1853_v14, %v699_v22  ;;  %v611_v26 = vsub.f32 1.0, %v610_v15  ;;  %v1837_v14 = vld [vmem:[%s2350_s3] ss:$0 sm:$0xff]  ;;  %v1730_v22 = vld [vmem:[#allocation6 + $0xec] sm:$0xf0] }
 0x3ca   : > { %v708_v27 = vsel %vm705_vm15, %v707_v24, %v703_v25  ;;  %v830_v61 = vsub.f32 1.0, %v829_v60  ;;  %v1728_v15 = vld [vmem:[#allocation6 + $0xe4] sm:$0xf]  ;;  %v1611_v24 = vld [vmem:[#allocation6 + $0xf0] sm:$0xf0] }
 0x3cb   : > { %v612_v29 = vmul.f32 %v1855_v21, %v611_v26  ;;  %v709_v30 = vmul.f32 %v1849_v6, %v708_v27  ;;  %v1617_v25 = vld [vmem:[#allocation6 + $0xe8] sm:$0xf]  ;;  %v1731_v26 = vld [vmem:[#allocation6 + $0xf4] sm:$0xf0]  ;;  %v1614_v27 = vor.u32 %v1728_v15, %v1611_v24  ;;  %v1529_v15 = vld [vmem:[#allocation6 + $0x40] sm:$0xf] }
 0x3cc   : > { %v711_v32 = vpop.permute.xlu0 %710  ;;  %v831_v62 = vmul.f32 %v1857_v59, %v830_v61  ;;  %v1618_v28 = vor.u32 %v1731_v26, %v1617_v25  ;;  %v1561_v61 = vld [vmem:[#allocation6 + $0x80] sm:$0xf]  ;;  %v1708_v24 = vld [vmem:[#allocation6 + $0x44] sm:$0xf]  ;;  %v1531_v26 = vld [vmem:[#allocation6 + $0x50] sm:$0xf0] }
 0x3cd   : > { %731 = vmatpush.msra.mxu2 %v711_v32  ;;  %v613_v33 = vadd.f32 %v1855_v21, %v612_v29  ;;  %v1729_v29 = vld [vmem:[#allocation6 + $0xec] sm:$0xf]  ;;  %1099 = vmatpush.bf16.msrb.mxu0 %v1614_v27  ;;  %v1537_v27 = vld [vmem:[#allocation6 + $0x48] sm:$0xf] }
 0x3ce   : > { %1462 = vmatmul.msk.f32.vlgmr.msra.gmra.mxu2 %vm434_vm2, %v709_v30  ;;  %v832_v63 = vadd.f32 %v1857_v59, %v831_v62  ;;  %v1619_v30 = vld [vmem:[#allocation6 + $0xf8] sm:$0xf0]  ;;  %v1718_v62 = vld [vmem:[#allocation6 + $0x8c] sm:$0xf0] }
 0x3cf   : > { %v617_v35 = vsel %vm616_vm3, %v1855_v21, %v613_v33  ;;  %v1609_v21 = vld [vmem:[#allocation6 + $0xe0] sm:$0xf]  ;;  %v1622_v32 = vor.u32 %v1729_v29, %v1619_v30  ;;  %v1726_v33 = vld [vmem:[#allocation6 + $0xcc] sm:$0xf0]  ;;  %1112 = vmatpush.bf16.msrb.mxu2 %v1618_v28  ;;  %v1711_v28 = vld [vmem:[#allocation6 + $0x54] sm:$0xf0]  ;;  %v1534_v29 = vor.u32 %v1708_v24, %v1531_v26 }
 0x3d0   : > { %v622_v36 = vsel %vm619_vm4, %v621_v34, %v617_v35  ;;  %v2293_v0 = vsel %vm833_vm6, %v1857_v59, %v832_v63  ;;  %v1610_v23 = vor.u32 %v1730_v22, %v1609_v21  ;;  %v1724_v34 = vld [vmem:[#allocation6 + $0xc4] sm:$0xf]  ;;  %v1595_v35 = vld [vmem:[#allocation6 + $0xd0] sm:$0xf0]  ;;  %v1587_v59 = vld [vmem:[#allocation6 + $0xb8] sm:$0xf0]  ;;  %v1538_v30 = vor.u32 %v1711_v28, %v1537_v27 }
 0x3d1   : > { %v623_v37 = vmul.f32 %v1851_v8, %v622_v36  ;;  %v1594_v36 = vor.u32 %v1726_v33, %v1593_v31  ;;  %1125 = vmatpush.bf16.msra.mxu1 %v1622_v32  ;;  %v1590_v60 = vor.u32 %v1721_v58, %v1587_v59  ;;  %v1716_v63 = vld [vmem:[#allocation6 + $0x84] sm:$0xf]  ;;  %v1555_v21 = vld [vmem:[#allocation6 + $0x78] sm:$0xf0]  ;;  %v1709_v31 = vld [vmem:[#allocation6 + $0x4c] sm:$0xf] }
 0x3d2   : > { %1086 = vmatpush.bf16.msrb.mxu3 %v1610_v23  ;;  %v1710_v23 = vld [vmem:[#allocation6 + $0x4c] sm:$0xf0]  ;;  %v1539_v32 = vld [vmem:[#allocation6 + $0x58] sm:$0xf0]  ;;  %v1732_v24 = vld [vmem:[#allocation9] sm:$0xff] }
 0x3d3   : > { %1459 = vmatmul.msk.f32.vlgmr.msra.gmra.mxu3 %vm434_vm2, %v623_v37  ;;  %vm654_vm2 = vcmask 785920   ;;  %v1598_v37 = vor.u32 %v1724_v34, %v1595_v35  ;;  %v1530_v25 = vor.u32 %v1710_v23, %v1529_v15  ;;  %v1542_v33 = vor.u32 %v1709_v31, %v1539_v32  ;;  %v1513_v34 = vld [vmem:[#allocation6 + $0x20] sm:$0xf]  ;;  %v1706_v35 = vld [vmem:[#allocation6 + $0x2c] sm:$0xf0] }
 0x3d4   : > { %v1507_v58 = vld [vmem:[#allocation6 + $0x18] sm:$0xf0]  ;;  %v1733_v15 = vld [vmem:[#allocation9 + $0x8] sm:$0xff] }
 0x3d5   : > { %1100 = vmatpush.bf16.msrb.mxu0 %v1598_v37  ;;  %1126 = vmatpush.bf16.msra.mxu1 %v1606_v43  ;;  %v1514_v37 = vor.u32 %v1706_v35, %v1513_v34  ;;  %v1705_v43 = vld [vmem:[#allocation6 + $0x2c] sm:$0xf] }
 0x3d6   : > { %1087 = vmatpush.bf16.msrb.mxu3 %v1594_v36  ;;  %v1704_v36 = vld [vmem:[#allocation6 + $0x24] sm:$0xf] }
 0x3d9   : > { %1127 = vmatpush.bf16.msra.mxu1 %v1590_v60  ;;  %v1747_v60 = vld [vmem:[#allocation9 + $0x78] sm:$0xff] }
 0x451   : > { %v733_v38 = vpop.f32.mrf.mxu2 }
 0x452   : > { %737 = vrot.lane.b32.xlu2 %v733_v38, %s2070_s20  ;;  %v1601_v38 = vld [vmem:[#allocation6 + $0xc8] sm:$0xf]  ;;  %s1333_s20 = sshll.u32 %s390_s18, 4  ;;  %s1334_s20 = int_to_ptr.vmem [resolvable:$true] %s1333_s20 }
 0x456   : > { %v647_v39 = vpop.f32.mrf.mxu3 }
 0x457   : > { %651 = vrot.lane.b32.xlu0 %v647_v39, %s2071_s21  ;;  %v1727_v39 = vld [vmem:[#allocation6 + $0xd4] sm:$0xf0]  ;;  %s1335_s21 = sshll.u32 %s1331_s15, 4  ;;  %s1336_s21 = int_to_ptr.hbm [resolvable:$true] %s1335_s21 }
 0x458   : > { %v1602_v41 = vor.u32 %v1727_v39, %v1601_v38  ;;  %v1515_v38 = vld [vmem:[#allocation6 + $0x30] sm:$0xf0]  ;;  %v1521_v39 = vld [vmem:[#allocation6 + $0x28] sm:$0xf]  ;;  %s2000_s27 = sshra.s32 %s1336_s21, 4  ;;  %s2001_s27 = int_to_ptr.hbm [resolvable:$true] %s2000_s27 }
 0x459   : > { %v1522_v42 = vor.u32 %v1707_v40, %v1521_v39  ;;  %s2002_s14 = scalar_lea.hbm %s2001_s27, 8  ;;  %p2007_p3 = scmp.lt.s32.totalorder %s2001_s27, %s2356_s9 }
 0x45a   : > { %1113 = vmatpush.bf16.msrb.mxu2 %v1602_v41  ;;  %v1518_v41 = vor.u32 %v1704_v36, %v1515_v38  ;;  %p2003_p0 = scmp.ne.s32.totalorder %s2001_s27, %s2002_s14  ;;  %p2008_p4 = scmp.lt.s32.totalorder %s2006_s23, %s2002_s14 }
 0x45c   : > { %p2004_p1 = pnand %p2003_p0, %p2162_p5  ;;  %p2009_p7 = por %p2008_p4, %p2007_p3 }
 0x45e   : > { %p2005_p2 = pneg %p2004_p1 }
 0x460   : > { %p2010_p8 = pnand %p2009_p7, %p2005_p2 }
 0x4ac   : > { %v738_v49 = vpop.permute.xlu2 %737 }
 0x4c9   : > { %v652_v48 = vpop.permute.xlu0 %651 }
 0x4ca   : > { %655 = vst.msk [vmem:[#allocation2] sm:$0xff] %vm654_vm2, %v652_v48  ;;  %v1577_v48 = vld [vmem:[#allocation6 + $0xa0] sm:$0xf] }
 0x4cb   : > { %741 = vst.msk [vmem:[#allocation2] sm:$0xff] %vm740_vm5, %v738_v49  ;;  %v1722_v49 = vld [vmem:[#allocation6 + $0xac] sm:$0xf0] }
 0x4d2   : > { %v742_v50 = vld [vmem:[#allocation2] sm:$0xff] }
 0x4d3   : > { %v743_v51 = vpack.c.bf16 %v742_v50, %v742_v50  ;;  %v1720_v50 = vld [vmem:[#allocation6 + $0xa4] sm:$0xf] }
 0x4d5   : > { %820 = vmatmul.bf16.vlgmr.msrb.gmra.mxu1 %v743_v51  ;;  %v1578_v51 = vor.u32 %v1722_v49, %v1577_v48  ;;  %v1702_v48 = vld [vmem:[#allocation6 + $0xc] sm:$0xf0]  ;;  %v1700_v49 = vld [vmem:[#allocation6 + $0x4] sm:$0xf] }
 0x4d7   : > { %1088 = vmatpush.bf16.msrb.mxu3 %v1578_v51  ;;  %v1499_v51 = vld [vmem:[#allocation6 + $0x10] sm:$0xf0] }
 0x552   : > { %v821_v54 = vpop.f32.mrf.mxu1 }
 0x553   : > { %v822_v55 = vadd.f32 %v1836_v52, %v821_v54  ;;  %v1579_v52 = vld [vmem:[#allocation6 + $0xb0] sm:$0xf0]  ;;  %v1723_v54 = vld [vmem:[#allocation6 + $0xb4] sm:$0xf0] }
 0x555   : > { %v2290_v56 = vadd.f32 %v822_v55, %v396_v53  ;;  %v1585_v53 = vld [vmem:[#allocation6 + $0xa8] sm:$0xf]  ;;  %v1582_v55 = vor.u32 %v1720_v50, %v1579_v52 }
 0x556   : > { %v1505_v52 = vld [vmem:[#allocation6 + $0x8] sm:$0xf] }
 0x557   : > { %826 = vadd.xlane.f32.xlu0 %v2290_v56  ;;  %1101 = vmatpush.bf16.msrb.mxu0 %v1582_v55 }
 0x55a   : > { %v823_v57 = vpop.f32.mrf.mxu1 }
 0x55b   : > { %v1586_v57 = vor.u32 %v1723_v54, %v1585_v53  ;;  %v1703_v53 = vld [vmem:[#allocation6 + $0x14] sm:$0xf0]  ;;  %v1502_v54 = vor.u32 %v1700_v49, %v1499_v51 }
 0x55c   : > { %v1506_v55 = vor.u32 %v1703_v53, %v1505_v52 }
 0x55d   : > { %1114 = vmatpush.bf16.msrb.mxu2 %v1586_v57  ;;  %v1701_v57 = vld [vmem:[#allocation6 + $0xc] sm:$0xf] }
 0x55e   : > { %v1510_v59 = vor.u32 %v1701_v57, %v1507_v58 }
 0x5ca   : > { %v827_v1 = vpop.xlane.xlu0 %826 }
 0x5cb   : > { %v835_v2 = vmul.f32 %v2293_v0, %v827_v1  ;;  %v1562_v1 = vor.u32 %v1718_v62, %v1561_v61 }
 0x5cd   : > { %v836_v3 = vsub.f32 %v2290_v56, %v835_v2  ;;  %v1563_v2 = vld [vmem:[#allocation6 + $0x90] sm:$0xf0]  ;;  %1089 = vmatpush.bf16.msrb.mxu3 %v1562_v1 }
 0x5cf   : > { %v837_v4 = vmul.f32 %v836_v3, %v836_v3 }
 0x5d1   : > { %838 = vadd.xlane.f32.xlu2 %v837_v4  ;;  %v1719_v4 = vld [vmem:[#allocation6 + $0x94] sm:$0xf0] }
 0x644   : > { %v839_v5 = vpop.xlane.xlu2 %838 }
 0x645   : > { %v840_v6 = vmul.f32 %v839_v5, %v2293_v0  ;;  %v1566_v5 = vor.u32 %v1716_v63, %v1563_v2 }
 0x647   : > { %v841_v7 = vadd.f32 1e-05, %v840_v6  ;;  %1102 = vmatpush.bf16.msrb.mxu0 %v1566_v5 }
 0x649   : > { %1858 = vrsqrt.f32 %v841_v7  ;;  %vm848_vm8 = vweird.f32 %v841_v7 }
 0x64f   : > { %v1859_v8 = vpop.eup %1858 }
 0x650   : > { %v843_v9 = vmul.f32 %v1859_v8, %v841_v7  ;;  %vm849_vm7 = vweird.f32 %v1859_v8  ;;  %v1717_v7 = vld [vmem:[#allocation6 + $0x8c] sm:$0xf] }
 0x651   : > { %vm850_vm9 = vmor %vm848_vm8, %vm849_vm7 }
 0x652   : > { %v844_v10 = vmul.f32 %v1859_v8, %v843_v9 }
 0x654   : > { %v845_v11 = vmul.f32 0.5, %v844_v10  ;;  %v1545_v10 = vld [vmem:[#allocation6 + $0x60] sm:$0xf] }
 0x656   : > { %v846_v12 = vsub.f32 1.5, %v845_v11  ;;  %v1714_v11 = vld [vmem:[#allocation6 + $0x6c] sm:$0xf0] }
 0x658   : > { %v847_v13 = vmul.f32 %v1859_v8, %v846_v12  ;;  %v1712_v12 = vld [vmem:[#allocation6 + $0x64] sm:$0xf] }
 0x65a   : > { %v851_v16 = vsel %vm850_vm9, %v1859_v8, %v847_v13  ;;  %v1571_v8 = vld [vmem:[#allocation6 + $0x98] sm:$0xf0]  ;;  %v1546_v13 = vor.u32 %v1714_v11, %v1545_v10  ;;  %v1745_v11 = vld [vmem:[#allocation9 + $0x68] sm:$0xff] }
 0x65b   : > { %v852_v17 = vmul.f32 %v851_v16, %v836_v3  ;;  %v1569_v3 = vld [vmem:[#allocation6 + $0x88] sm:$0xf]  ;;  %v1574_v9 = vor.u32 %v1717_v7, %v1571_v8  ;;  %v1739_v10 = vld [vmem:[#allocation9 + $0x38] sm:$0xff] }
 0x65c   : > { %v1570_v6 = vor.u32 %v1719_v4, %v1569_v3  ;;  %v1553_v16 = vld [vmem:[#allocation6 + $0x68] sm:$0xf]  ;;  %1090 = vmatpush.bf16.msrb.mxu3 %v1546_v13 }
 0x65d   : > { %v857_v19 = vmul.f32 %v1837_v14, %v852_v17  ;;  %1128 = vmatpush.bf16.msra.mxu1 %v1574_v9  ;;  %v1547_v14 = vld [vmem:[#allocation6 + $0x70] sm:$0xf0]  ;;  %v1715_v17 = vld [vmem:[#allocation6 + $0x74] sm:$0xf0]  ;;  %v1744_v13 = vld [vmem:[#allocation9 + $0x60] sm:$0xff] }
 0x65e   : > { %1115 = vmatpush.bf16.msrb.mxu2 %v1570_v6 }
 0x65f   : > { %v862_v20 = vadd.f32 %v1838_v18, %v857_v19  ;;  %v1550_v18 = vor.u32 %v1712_v12, %v1547_v14  ;;  %v1554_v19 = vor.u32 %v1715_v17, %v1553_v16  ;;  %v1738_v12 = vld [vmem:[#allocation9 + $0x30] sm:$0xff]  ;;  %v1737_v14 = vld [vmem:[#allocation9 + $0x28] sm:$0xff]  ;;  %v1743_v16 = vld [vmem:[#allocation9 + $0x58] sm:$0xff] }
 0x660   : > { %1091 = vmatpush.bf16.msrb.mxu3 %v1530_v25  ;;  %v1742_v17 = vld [vmem:[#allocation9 + $0x50] sm:$0xff] }
 0x661   : > { %863 = vadd.xlane.f32.xlu1 %v862_v20  ;;  %1103 = vmatpush.bf16.msrb.mxu0 %v1550_v18  ;;  %v1735_v18 = vld [vmem:[#allocation9 + $0x18] sm:$0xff] }
 0x662   : > { %1116 = vmatpush.bf16.msrb.mxu2 %v1554_v19  ;;  %v1741_v19 = vld [vmem:[#allocation9 + $0x48] sm:$0xff] }
 0x664   : > { %1092 = vmatpush.bf16.msrb.mxu3 %v1514_v37 }
 0x665   : > { %1104 = vmatpush.bf16.msrb.mxu0 %v1534_v29 }
 0x666   : > { %1117 = vmatpush.bf16.msrb.mxu2 %v1538_v30 }
 0x669   : > { %1105 = vmatpush.bf16.msrb.mxu0 %v1518_v41 }
 0x66a   : > { %1118 = vmatpush.bf16.msrb.mxu2 %v1522_v42 }
 0x66d   : > { %1106 = vmatpush.bf16.msrb.mxu0 %v1502_v54 }
 0x66e   : > { %1119 = vmatpush.bf16.msrb.mxu2 %v1506_v55 }
 0x671   : > { %1305 = vmatpush.bf16.msra.mxu0 %v1747_v60 }
 0x6d4   : > { %v864_v44 = vpop.xlane.xlu1 %863 }
 0x6d5   : > { %v865_v45 = vmul.f32 %v864_v44, %v2293_v0  ;;  %v1523_v44 = vld [vmem:[#allocation6 + $0x38] sm:$0xf0] }
 0x6d7   : > { %v2305_v46 = vsub.f32 %v862_v20, %v865_v45  ;;  %v1713_v20 = vld [vmem:[#allocation6 + $0x6c] sm:$0xf]  ;;  %v1526_v45 = vor.u32 %v1705_v43, %v1523_v44 }
 0x6d8   : > { %v1558_v22 = vor.u32 %v1713_v20, %v1555_v21  ;;  %v1734_v20 = vld [vmem:[#allocation9 + $0x10] sm:$0xff]  ;;  %v1740_v21 = vld [vmem:[#allocation9 + $0x40] sm:$0xff] }
 0x6d9   : > { %v867_v47 = vmul.f32 %v2305_v46, %v2305_v46 }
 0x6da   : > { %1129 = vmatpush.bf16.msra.mxu1 %v1558_v22  ;;  %v916_v22 = vld [vmem:[#allocation8] sm:$0xf] }
 0x6db   : > { %868 = vadd.xlane.f32.xlu0 %v867_v47  ;;  %v1497_v47 = vld [vmem:[#allocation6] sm:$0xf]  ;;  %v919_v23 = vperm.slane %v916_v22, 1  ;;  %v918_v29 = vperm.slane %v916_v22, 0  ;;  %v920_v54 = vperm.slane %v916_v22, 2 }
 0x6dc   : > { %v1498_v50 = vor.u32 %v1702_v48, %v1497_v47  ;;  %v921_v47 = vperm.slane %v916_v22, 3 }
 0x6de   : > { %1130 = vmatpush.bf16.msra.mxu1 %v1542_v33  ;;  %1093 = vmatpush.bf16.msrb.mxu3 %v1498_v50 }
 0x6e2   : > { %1131 = vmatpush.bf16.msra.mxu1 %v1526_v45  ;;  %1292 = vmatpush.bf16.msra.mxu3 %v1739_v10 }
 0x6e6   : > { %1132 = vmatpush.bf16.msra.mxu1 %v1510_v59  ;;  %1293 = vmatpush.bf16.msra.mxu3 %v1738_v12 }
 0x6ea   : > { %1294 = vmatpush.bf16.msra.mxu3 %v1737_v14 }
 0x74e   : > { %v869_v61 = vpop.xlane.xlu0 %868 }
 0x74f   : > { %v870_v62 = vmul.f32 %v869_v61, %v2293_v0  ;;  %v1746_v0 = vld [vmem:[#allocation9 + $0x70] sm:$0xff] }
 0x750   : > { %1306 = vmatpush.bf16.msra.mxu0 %v1746_v0 }
 0x751   : > { %v871_v63 = vadd.f32 1e-06, %v870_v62 }
 0x753   : > { %1860 = vrsqrt.f32 %v871_v63  ;;  %vm878_vm11 = vweird.f32 %v871_v63 }
 0x754   : > { %1307 = vmatpush.bf16.msra.mxu0 %v1745_v11 }
 0x758   : > { %1308 = vmatpush.bf16.msra.mxu0 %v1744_v13 }
 0x759   : > { %v1861_v1 = vpop.eup %1860 }
 0x75a   : > { %v873_v2 = vmul.f32 %v1861_v1, %v871_v63  ;;  %vm879_vm10 = vweird.f32 %v1861_v1 }
 0x75b   : > { %vm880_vm12 = vmor %vm878_vm11, %vm879_vm10 }
 0x75c   : > { %v874_v3 = vmul.f32 %v1861_v1, %v873_v2  ;;  %1309 = vmatpush.bf16.msra.mxu0 %v1743_v16 }
 0x75e   : > { %v875_v4 = vmul.f32 0.5, %v874_v3  ;;  %v1839_v3 = vld [vmem:[%s2355_s8] ss:$0 sm:$0xff] }
 0x760   : > { %v876_v5 = vsub.f32 1.5, %v875_v4  ;;  %1310 = vmatpush.bf16.msra.mxu0 %v1742_v17 }
 0x762   : > { %v877_v6 = vmul.f32 %v1861_v1, %v876_v5 }
 0x764   : > { %v881_v7 = vsel %vm880_vm12, %v1861_v1, %v877_v6  ;;  %1311 = vmatpush.bf16.msra.mxu0 %v1741_v19 }
 0x765   : > { %v882_v8 = vmul.f32 %v881_v7, %v2305_v46  ;;  %v1736_v46 = vld [vmem:[#allocation9 + $0x20] sm:$0xff] }
 0x766   : > { %1295 = vmatpush.bf16.msra.mxu3 %v1736_v46 }
 0x767   : > { %v883_v9 = vpack.c.bf16 %v882_v8, %v882_v8 }
 0x768   : > { %1312 = vmatpush.bf16.msra.mxu0 %v1740_v21 }
 0x769   : > { %1094 = vmatmul.bf16.vlgmr.msrb.gmra.mxu3 %v883_v9  ;;  %1107 = vmatmul.bf16.vlgmr.msrb.gmra.mxu0 %v883_v9 }
 0x76a   : > { %1120 = vmatmul.bf16.vlgmr.msrb.gmra.mxu2 %v883_v9  ;;  %1133 = vmatmul.bf16.vlgmr.msra.gmra.mxu1 %v883_v9 }
 0x76b   : > { %1296 = vmatpush.bf16.msra.mxu3 %v1735_v18 }
 0x76f   : > { %1297 = vmatpush.bf16.msra.mxu3 %v1734_v20 }
 0x773   : > { %1298 = vmatpush.bf16.msra.mxu3 %v1733_v15 }
 0x777   : > { %1299 = vmatpush.bf16.msra.mxu3 %v1732_v24 }
 0x7e6   : > { %v1108_v25 = vpop.f32.mrf.mxu0 }
 0x7e7   : > { %v1109_v26 = vadd.f32 %v1108_v25, %v919_v23  ;;  %v1134_v27 = vpop.f32.mrf.mxu1 }
 0x7e8   : > { %v1135_v51 = vadd.f32 %v1134_v27, %v921_v47 }
 0x7e9   : > { %v1141_v28 = vmul.f32 0.044715, %v1109_v26  ;;  %v1139_v49 = vmul.f32 0.5, %v1109_v26 }
 0x7eb   : > { %v1143_v30 = vmul.f32 %v1141_v28, %v1109_v26 }
 0x7ec   : > { %v1095_v31 = vpop.f32.mrf.mxu3 }
 0x7ed   : > { %v1145_v32 = vmul.f32 %v1143_v30, %v1109_v26  ;;  %v1096_v33 = vadd.f32 %v1095_v31, %v918_v29  ;;  %v1121_v34 = vpop.f32.mrf.mxu2 }
 0x7ee   : > { %v1110_v35 = vpop.f32.mrf.mxu0  ;;  %v1122_v60 = vadd.f32 %v1121_v34, %v920_v54 }
 0x7ef   : > { %v1147_v36 = vadd.f32 %v1145_v32, %v1109_v26  ;;  %v1140_v37 = vmul.f32 0.044715, %v1096_v33  ;;  %v1136_v38 = vpop.f32.mrf.mxu1  ;;  %v1138_v58 = vmul.f32 0.5, %v1096_v33 }
 0x7f1   : > { %v1149_v39 = vmul.f32 0.7978846, %v1147_v36  ;;  %v1142_v40 = vmul.f32 %v1140_v37, %v1096_v33 }
 0x7f3   : > { %1862 = vtanh.f32 %v1149_v39  ;;  %v1144_v41 = vmul.f32 %v1142_v40, %v1096_v33 }
 0x7f4   : > { %v1097_v42 = vpop.f32.mrf.mxu3 }
 0x7f5   : > { %v1146_v43 = vadd.f32 %v1144_v41, %v1096_v33  ;;  %v1123_v44 = vpop.f32.mrf.mxu2 }
 0x7f7   : > { %v1148_v45 = vmul.f32 0.7978846, %v1146_v43 }
 0x7f9   : > { %v1863_v48 = vpop.eup %1862  ;;  %1864 = vtanh.f32 %v1148_v45 }
 0x7fa   : > { %v1153_v50 = vadd.f32 1.0, %v1863_v48 }
 0x7fc   : > { %v1155_v52 = vmul.f32 %v1153_v50, %v1139_v49 }
 0x7fe   : > { %v1157_v53 = vmul.f32 %v1155_v52, %v1135_v51 }
 0x7ff   : > { %v1865_v55 = vpop.eup %1864 }
 0x800   : > { %v1159_v57 = vpack.c.bf16 %v1157_v53, %v1157_v53  ;;  %v1152_v59 = vadd.f32 1.0, %v1865_v55 }
 0x802   : > { %v1154_v61 = vmul.f32 %v1152_v59, %v1138_v58  ;;  %1313 = vmatmul.bf16.vlgmr.msra.gmra.mxu0 %v1159_v57 }
 0x804   : > { %v1156_v62 = vmul.f32 %v1154_v61, %v1122_v60 }
 0x806   : > { %v1158_v63 = vpack.c.bf16 %v1156_v62, %v1156_v62 }
 0x808   : > { %1300 = vmatmul.bf16.vlgmr.msra.gmra.mxu3 %v1158_v63 }
 0x87f   : > { %v1314_v1 = vpop.f32.mrf.mxu0 }
 0x887   : > { %v1316_v2 = vpop.f32.mrf.mxu0 }
 0x88b   : > { %v1301_v4 = vpop.f32.mrf.mxu3 }
 0x88c   : > { %v1302_v5 = vadd.f32 %v1839_v3, %v1301_v4 }
 0x88e   : > { %v1315_v6 = vadd.f32 %v1314_v1, %v1302_v5 }
 0x890   : > { %v1318_v7 = vadd.f32 %v1315_v6, %v2290_v56 }
 0x892   : > { %1319 = vst [vmem:[%s390_s18] sm:$0xff] %v1318_v7 }
 0x893   : > { %v1303_v8 = vpop.f32.mrf.mxu3 }
 0x894   : > { %2013 = shalt.err (!%p2010_p8)
}
 0x895   : > { %1764 = dma.vmem_to_hbm [thread:$0]  (%p2162_p5), %s1334_s20, 128, %s1336_s21, %s1321_s13  }
 0x896 PF: > { %p1791_p9 = scmp.ge.s32.totalorder %s2060_s12, 2  ;;  %s1347_s24 = sand.u32 1, %s2048_s30  }
 0x897   : > { %s1348_s26 = scalar_lea.sflag [#allocation5], %s1347_s24 }
 0x898   : > { %p1780_p10 = pnand %p1791_p9, %p2166_p6 }
 0x89a   : > { %p1781_p11 = pneg %p1780_p10 }
 0x89c   : > { %2043 = dma.done.wait (%p1781_p11), %s1348_s26, 128  }
 0x89d   : > { %2045 = vsyncadd (%p1781_p11), %s1348_s26, 4294967168  ;;  %s2374_s12 = sld [smem:[#allocation17_spill]]  ;;  %s2377_s30 = smov %s2052_s10 }
 0x89e   : > { %s2375_s16 = sld [smem:[#allocation16_spill]] }
 0x89f   : > { %s2376_s11 = sld [smem:[#allocation18_spill]] }
 0x8a3   : > { %p22_p12 = scmp.ge.s32.totalorder %s2374_s12, 4  }
 0x8a4   : > { %s2378_s10 = smov %s2375_s16 }
 0x8a5   :  { %24 = sbr.rel (!%p22_p12) target bundleno = 9 (0x9), region = 108 }
 0x8aa   :  { %1354 = vsyncpa [#allocation4], 1 }
 0x8ab   :  { %1356 = vsyncpa [#allocation4 + $0x1], 1 }
 0x8ac   :  { %1357 = vsyncpa [#allocation7], 1 }
 0x8ad   :  { %1358 = vsyncpa [#allocation10], 1 }
 0x8ae   :  { %1359 = vsyncpa [#allocation5], 1 }
 0x8af   :  { %1361 = vsyncpa [#allocation5 + $0x1], 1 }

</bundles_post_ra>
